<compile_context>
chip_gen: v7x
topology: tpu7x:2x2x1
jax: 0.10.0
libtpu: 0.0.40
codegen_flags: <defaults>
</compile_context>

<pallas_src>
import functools
import math

import jax
import jax.numpy as jnp
from jax import lax
from jax.experimental import pallas as pl
from jax.experimental.pallas import tpu as pltpu


# ----------------------------------------------------------------------------
# Kernel 1: fused multi-head attention (one batch element per grid step)
# ----------------------------------------------------------------------------
def _mha_kernel(xq_ref, xkv_ref, mask_ref, wq_ref, wk_ref, wv_ref, wo_ref,
                out_ref, scores_ref, *, num_heads, head_dim, scale):
    """
    xq_ref     : (Sq, H)            query-side hidden states
    xkv_ref    : (Skv, H)           key/value-side hidden states
    mask_ref   : (Sq, Skv)          additive mask (1 = masked, 0 = keep)
    w*_ref     : (H, H)             projection weights in (in, out) layout
    out_ref    : (Sq, H)            attention output (after Wo)
    scores_ref : (num_heads, Sq, Skv) softmax attention probabilities
    """
    xq = xq_ref[...]
    xkv = xkv_ref[...]

    # Full-width projections on the MXU (lane-dense, H multiple of 128).
    q = jnp.dot(xq, wq_ref[...], preferred_element_type=jnp.float32)
    k = jnp.dot(xkv, wk_ref[...], preferred_element_type=jnp.float32)
    v = jnp.dot(xkv, wv_ref[...], preferred_element_type=jnp.float32)

    neg = mask_ref[...] * jnp.float32(-1e9)

    acc = jnp.zeros(out_ref.shape, jnp.float32)
    # Static head loop (small head count); head slices are static lane/sublane slices.
    for h in range(num_heads):
        sl = slice(h * head_dim, (h + 1) * head_dim)
        qh = q[:, sl]                      # (Sq, hd)
        kh = k[:, sl]                      # (Skv, hd)
        vh = v[:, sl]                      # (Skv, hd)

        # qh @ kh^T via dot_general (contract last dims; no explicit transpose).
        logits = lax.dot_general(qh, kh, (((1,), (1,)), ((), ())),
                                 preferred_element_type=jnp.float32)
        logits = (logits + neg) * scale    # matches torch: (QK^T + mask*-1e9)/sqrt(hd)

        m = jnp.max(logits, axis=-1, keepdims=True)
        e = jnp.exp(logits - m)
        probs = e / jnp.sum(e, axis=-1, keepdims=True)
        scores_ref[h, :, :] = probs

        ctx_h = jnp.dot(probs, vh, preferred_element_type=jnp.float32)  # (Sq, hd)
        # Merge-heads + Wo fused: ctx @ Wo == sum_h ctx_h @ Wo[h*hd:(h+1)*hd, :]
        acc = acc + jnp.dot(ctx_h, wo_ref[sl, :], preferred_element_type=jnp.float32)

    out_ref[...] = acc


def mha_pallas(xq, xkv, mask, wq, wk, wv, wo, num_heads):
    B, Sq, H = xq.shape
    Skv = xkv.shape[1]
    head_dim = H // num_heads
    scale = 1.0 / math.sqrt(head_dim)

    kernel = functools.partial(_mha_kernel, num_heads=num_heads,
                               head_dim=head_dim, scale=scale)

    out, scores = pl.pallas_call(
        kernel,
        out_shape=(jax.ShapeDtypeStruct((B, Sq, H), jnp.float32),
                   jax.ShapeDtypeStruct((B, num_heads, Sq, Skv), jnp.float32)),
        grid=(B,),
        in_specs=[
            pl.BlockSpec((None, Sq, H), lambda b: (b, 0, 0)),
            pl.BlockSpec((None, Skv, H), lambda b: (b, 0, 0)),
            pl.BlockSpec((None, Sq, Skv), lambda b: (b, 0, 0)),
            pl.BlockSpec((H, H), lambda b: (0, 0)),
            pl.BlockSpec((H, H), lambda b: (0, 0)),
            pl.BlockSpec((H, H), lambda b: (0, 0)),
            pl.BlockSpec((H, H), lambda b: (0, 0)),
        ],
        out_specs=(
            pl.BlockSpec((None, Sq, H), lambda b: (b, 0, 0)),
            pl.BlockSpec((None, num_heads, Sq, Skv), lambda b: (b, 0, 0, 0)),
        ),
        compiler_params=pltpu.CompilerParams(dimension_semantics=("parallel",)),
    )(xq, xkv, mask, wq, wk, wv, wo)
    return out, scores


# ----------------------------------------------------------------------------
# Kernel 2: fused residual-add + LayerNorm over (row_tile, H) tiles
# ----------------------------------------------------------------------------
def _add_ln_kernel(x_ref, y_ref, g_ref, b_ref, out_ref, *, eps):
    z = x_ref[...] + y_ref[...]                        # (TM, H)
    mean = jnp.mean(z, axis=-1, keepdims=True)
    zc = z - mean
    var = jnp.mean(zc * zc, axis=-1, keepdims=True)
    inv = lax.rsqrt(var + eps)
    out_ref[...] = zc * inv * g_ref[...] + b_ref[...]


def add_ln_pallas(x, y, gamma, beta, eps):
    B, S, H = x.shape
    R = B * S
    row_tile = 8 if (R % 8 == 0) else R
    x2 = x.reshape(R, H)
    y2 = y.reshape(R, H)
    g2 = gamma.reshape(1, H)
    b2 = beta.reshape(1, H)

    kernel = functools.partial(_add_ln_kernel, eps=eps)
    out = pl.pallas_call(
        kernel,
        out_shape=jax.ShapeDtypeStruct((R, H), jnp.float32),
        grid=(R // row_tile,),
        in_specs=[
            pl.BlockSpec((row_tile, H), lambda i: (i, 0)),
            pl.BlockSpec((row_tile, H), lambda i: (i, 0)),
            pl.BlockSpec((1, H), lambda i: (0, 0)),
            pl.BlockSpec((1, H), lambda i: (0, 0)),
        ],
        out_specs=pl.BlockSpec((row_tile, H), lambda i: (i, 0)),
        compiler_params=pltpu.CompilerParams(dimension_semantics=("parallel",)),
    )(x2, y2, g2, b2)
    return out.reshape(B, S, H)


# ----------------------------------------------------------------------------
# Kernel 3: fused FFN (Linear-ReLU-Linear) + residual + LayerNorm
# ----------------------------------------------------------------------------
def _ffn_ln_kernel(x_ref, w1_ref, b1_ref, w2_ref, b2_ref, g_ref, be_ref, out_ref, *, eps):
    x = x_ref[...]                                                   # (TM, H)
    h = jnp.dot(x, w1_ref[...], preferred_element_type=jnp.float32) + b1_ref[...]
    h = jnp.maximum(h, 0.0)
    y = jnp.dot(h, w2_ref[...], preferred_element_type=jnp.float32) + b2_ref[...]
    z = x + y
    mean = jnp.mean(z, axis=-1, keepdims=True)
    zc = z - mean
    var = jnp.mean(zc * zc, axis=-1, keepdims=True)
    inv = lax.rsqrt(var + eps)
    out_ref[...] = zc * inv * g_ref[...] + be_ref[...]


def ffn_ln_pallas(x, w1, b1, w2, b2, gamma, beta, eps):
    B, S, H = x.shape
    F = w1.shape[1]
    R = B * S
    row_tile = 8 if (R % 8 == 0) else R
    x2 = x.reshape(R, H)

    kernel = functools.partial(_ffn_ln_kernel, eps=eps)
    out = pl.pallas_call(
        kernel,
        out_shape=jax.ShapeDtypeStruct((R, H), jnp.float32),
        grid=(R // row_tile,),
        in_specs=[
            pl.BlockSpec((row_tile, H), lambda i: (i, 0)),
            pl.BlockSpec((H, F), lambda i: (0, 0)),
            pl.BlockSpec((1, F), lambda i: (0, 0)),
            pl.BlockSpec((F, H), lambda i: (0, 0)),
            pl.BlockSpec((1, H), lambda i: (0, 0)),
            pl.BlockSpec((1, H), lambda i: (0, 0)),
            pl.BlockSpec((1, H), lambda i: (0, 0)),
        ],
        out_specs=pl.BlockSpec((row_tile, H), lambda i: (i, 0)),
        compiler_params=pltpu.CompilerParams(dimension_semantics=("parallel",)),
    )(x2, w1, b1.reshape(1, F), w2, b2.reshape(1, H),
      gamma.reshape(1, H), beta.reshape(1, H))
    return out.reshape(B, S, H)


# ----------------------------------------------------------------------------
# Full decoder forward (Python glue over the Pallas kernels)
# ----------------------------------------------------------------------------
def transformer_decoder_pallas(decoder_inputs_embeds, encoder_outputs, layer_params,
                               attn_mask=None, cross_attn_mask=None, *,
                               num_heads, eps):
    B, S, H = decoder_inputs_embeds.shape
    Se = encoder_outputs.shape[1]

    if attn_mask is None:
        attn_mask = jnp.zeros((B, S, S), jnp.float32)
    elif attn_mask.ndim == 4:
        attn_mask = attn_mask[:, 0, :S, :S]
    if cross_attn_mask is None:
        cross_attn_mask = jnp.zeros((B, S, Se), jnp.float32)
    elif cross_attn_mask.ndim == 4:
        cross_attn_mask = cross_attn_mask[:, 0, :S, :Se]

    embeds = decoder_inputs_embeds
    self_attn_scores, cross_attn_scores = [], []
    for p in layer_params:
        # self attention + residual + LN  (dropout = identity at inference)
        sa_out, sa_sc = mha_pallas(embeds, embeds, attn_mask,
                                   p['self_wq'], p['self_wk'], p['self_wv'], p['self_wo'],
                                   num_heads)
        embeds = add_ln_pallas(embeds, sa_out, p['self_ln_g'], p['self_ln_b'], eps)
        # cross attention + residual + LN
        ca_out, ca_sc = mha_pallas(embeds, encoder_outputs, cross_attn_mask,
                                   p['cross_wq'], p['cross_wk'], p['cross_wv'], p['cross_wo'],
                                   num_heads)
        embeds = add_ln_pallas(embeds, ca_out, p['cross_ln_g'], p['cross_ln_b'], eps)
        # FFN + residual + LN (fully fused)
        embeds = ffn_ln_pallas(embeds, p['ffn_w1'], p['ffn_b1'], p['ffn_w2'], p['ffn_b2'],
                               p['ffn_ln_g'], p['ffn_ln_b'], eps)
        self_attn_scores.append(sa_sc)
        cross_attn_scores.append(ca_sc)
    # TODO(synk): training-mode dropout (stateful PRNG masks) not implemented.
    return embeds, self_attn_scores, cross_attn_scores


# ----------------------------------------------------------------------------
# Pure-JAX reference (same math, for correctness check)
# ----------------------------------------------------------------------------
def _ref_mha(xq, xkv, mask, wq, wk, wv, wo, num_heads):
    B, Sq, H = xq.shape
    Skv = xkv.shape[1]
    hd = H // num_heads

    def split(x, S):
        return x.reshape(B, S, num_heads, hd).transpose(0, 2, 1, 3)

    q = split(xq @ wq, Sq)
    k = split(xkv @ wk, Skv)
    v = split(xkv @ wv, Skv)
    logits = jnp.einsum('bhqd,bhkd->bhqk', q, k)
    logits = logits + mask[:, None, :, :] * (-1e9)
    scores = jax.nn.softmax(logits / math.sqrt(hd), axis=-1)
    ctx = jnp.einsum('bhqk,bhkd->bhqd', scores, v)
    ctx = ctx.transpose(0, 2, 1, 3).reshape(B, Sq, H)
    return ctx @ wo, scores


def _ref_ln(z, g, b, eps):
    mu = z.mean(-1, keepdims=True)
    var = ((z - mu) ** 2).mean(-1, keepdims=True)
    return (z - mu) / jnp.sqrt(var + eps) * g + b


def ref_decoder(dec, enc, params, attn_mask, cross_mask, num_heads, eps):
    embeds = dec
    sss, css = [], []
    for p in params:
        sa, s_sc = _ref_mha(embeds, embeds, attn_mask,
                            p['self_wq'], p['self_wk'], p['self_wv'], p['self_wo'], num_heads)
        embeds = _ref_ln(embeds + sa, p['self_ln_g'], p['self_ln_b'], eps)
        ca, c_sc = _ref_mha(embeds, enc, cross_mask,
                            p['cross_wq'], p['cross_wk'], p['cross_wv'], p['cross_wo'], num_heads)
        embeds = _ref_ln(embeds + ca, p['cross_ln_g'], p['cross_ln_b'], eps)
        h = jnp.maximum(embeds @ p['ffn_w1'] + p['ffn_b1'], 0.0)
        y = h @ p['ffn_w2'] + p['ffn_b2']
        embeds = _ref_ln(embeds + y, p['ffn_ln_g'], p['ffn_ln_b'], eps)
        sss.append(s_sc)
        css.append(c_sc)
    return embeds, sss, css


# ----------------------------------------------------------------------------
# Parameter init
# ----------------------------------------------------------------------------
def init_decoder_params(key, num_layers, H, F):
    params = []
    s_h = 1.0 / math.sqrt(H)
    s_f = 1.0 / math.sqrt(F)
    for _ in range(num_layers):
        key, *ks = jax.random.split(key, 19)
        p = {
            'self_wq': jax.random.normal(ks[0], (H, H), jnp.float32) * s_h,
            'self_wk': jax.random.normal(ks[1], (H, H), jnp.float32) * s_h,
            'self_wv': jax.random.normal(ks[2], (H, H), jnp.float32) * s_h,
            'self_wo': jax.random.normal(ks[3], (H, H), jnp.float32) * s_h,
            'self_ln_g': 1.0 + 0.1 * jax.random.normal(ks[4], (H,), jnp.float32),
            'self_ln_b': 0.1 * jax.random.normal(ks[5], (H,), jnp.float32),
            'cross_wq': jax.random.normal(ks[6], (H, H), jnp.float32) * s_h,
            'cross_wk': jax.random.normal(ks[7], (H, H), jnp.float32) * s_h,
            'cross_wv': jax.random.normal(ks[8], (H, H), jnp.float32) * s_h,
            'cross_wo': jax.random.normal(ks[9], (H, H), jnp.float32) * s_h,
            'cross_ln_g': 1.0 + 0.1 * jax.random.normal(ks[10], (H,), jnp.float32),
            'cross_ln_b': 0.1 * jax.random.normal(ks[11], (H,), jnp.float32),
            'ffn_w1': jax.random.normal(ks[12], (H, F), jnp.float32) * s_h,
            'ffn_b1': 0.02 * jax.random.normal(ks[13], (F,), jnp.float32),
            'ffn_w2': jax.random.normal(ks[14], (F, H), jnp.float32) * s_f,
            'ffn_b2': 0.02 * jax.random.normal(ks[15], (H,), jnp.float32),
            'ffn_ln_g': 1.0 + 0.1 * jax.random.normal(ks[16], (H,), jnp.float32),
            'ffn_ln_b': 0.1 * jax.random.normal(ks[17], (H,), jnp.float32),
        }
        params.append(p)
    return params


if __name__ == "__main__":
    config = {
        'd_model': 128,            # lane-dense hidden size (multiple of 128)
        'num_heads': 4,
        'dim_feedforward': 256,    # lane-dense FFN width
        'dropout': 0.1,
        'layer_norm_eps': 1e-5,
        'num_decoder_layers': 2,
    }
    B, S_dec, S_enc = 2, 8, 16
    H = config['d_model']
    F = config['dim_feedforward']
    nh = config['num_heads']
    eps = config['layer_norm_eps']

    key = jax.random.PRNGKey(0)
    k_params, k_dec, k_enc = jax.random.split(key, 3)

    params = init_decoder_params(k_params, config['num_decoder_layers'], H, F)
    decoder_inputs_embeds = jax.random.normal(k_dec, (B, S_dec, H), jnp.float32)
    encoder_outputs = jax.random.normal(k_enc, (B, S_enc, H), jnp.float32)

    # Causal self-attention mask (1 = masked), no cross-attention mask.
    causal = jnp.triu(jnp.ones((S_dec, S_dec), jnp.float32), k=1)
    attn_mask = jnp.broadcast_to(causal, (B, S_dec, S_dec))
    cross_attn_mask = jnp.zeros((B, S_dec, S_enc), jnp.float32)

    out, self_sc, cross_sc = transformer_decoder_pallas(
        decoder_inputs_embeds, encoder_outputs, params,
        attn_mask=attn_mask, cross_attn_mask=cross_attn_mask,
        num_heads=nh, eps=eps)
    out = jax.block_until_ready(out)

    ref_out, ref_self, ref_cross = ref_decoder(
        decoder_inputs_embeds, encoder_outputs, params,
        attn_mask, cross_attn_mask, nh, eps)

    assert out.shape == (B, S_dec, H)
    # Loose smoke-test tolerance: MXU default-precision f32 matmul vs XLA reference.
    assert jnp.allclose(out, ref_out, atol=5e-2, rtol=5e-2), "hidden states mismatch"
    for a, b in zip(self_sc, ref_self):
        assert a.shape == (B, nh, S_dec, S_dec)
        assert jnp.allclose(a, b, atol=5e-2, rtol=5e-2), "self-attn scores mismatch"
    for a, b in zip(cross_sc, ref_cross):
        assert a.shape == (B, nh, S_dec, S_enc)
        assert jnp.allclose(a, b, atol=5e-2, rtol=5e-2), "cross-attn scores mismatch"

    print("KERNEL_OK")
</pallas_src>

<mosaic_0001>
module attributes {stable_mosaic.version = 11 : i64} {
  func.func @_mha_kernel(%arg0: i32, %arg1: memref<1x8x128xf32, #tpu.memory_space<vmem>>, %arg2: memref<1x8x128xf32, #tpu.memory_space<vmem>>, %arg3: memref<1x8x8xf32, #tpu.memory_space<vmem>>, %arg4: memref<128x128xf32, #tpu.memory_space<vmem>>, %arg5: memref<128x128xf32, #tpu.memory_space<vmem>>, %arg6: memref<128x128xf32, #tpu.memory_space<vmem>>, %arg7: memref<128x128xf32, #tpu.memory_space<vmem>>, %arg8: memref<1x8x128xf32, #tpu.memory_space<vmem>>, %arg9: memref<1x4x8x8xf32, #tpu.memory_space<vmem>>) attributes {dimension_semantics = [#tpu.dimension_semantics<parallel>], iteration_bounds = array<i64: 2>, scalar_prefetch = 0 : i64, scratch_operands = 0 : i64, tpu.core_type = #tpu.core_type<tc>, window_params = [{transform_indices = @transform_0, window_bounds = array<i64: 1, 8, 128>}, {transform_indices = @transform_1, window_bounds = array<i64: 1, 8, 128>}, {transform_indices = @transform_2, window_bounds = array<i64: 1, 8, 8>}, {pipeline_mode = #tpu.pipeline_mode<synchronous>, transform_indices = @transform_3, window_bounds = array<i64: 128, 128>}, {pipeline_mode = #tpu.pipeline_mode<synchronous>, transform_indices = @transform_4, window_bounds = array<i64: 128, 128>}, {pipeline_mode = #tpu.pipeline_mode<synchronous>, transform_indices = @transform_5, window_bounds = array<i64: 128, 128>}, {pipeline_mode = #tpu.pipeline_mode<synchronous>, transform_indices = @transform_6, window_bounds = array<i64: 128, 128>}, {transform_indices = @transform_7, window_bounds = array<i64: 1, 8, 128>}, {transform_indices = @transform_8, window_bounds = array<i64: 1, 4, 8, 8>}]} {
    %c0 = arith.constant 0 : index
    %c0_0 = arith.constant 0 : index
    %c0_1 = arith.constant 0 : index
    %0 = vector.load %arg1[%c0, %c0_0, %c0_1] : memref<1x8x128xf32, #tpu.memory_space<vmem>>, vector<1x8x128xf32>
    %1 = vector.shape_cast %0 : vector<1x8x128xf32> to vector<8x128xf32>
    %c0_2 = arith.constant 0 : index
    %c0_3 = arith.constant 0 : index
    %c0_4 = arith.constant 0 : index
    %2 = vector.load %arg2[%c0_2, %c0_3, %c0_4] : memref<1x8x128xf32, #tpu.memory_space<vmem>>, vector<1x8x128xf32>
    %3 = vector.shape_cast %2 : vector<1x8x128xf32> to vector<8x128xf32>
    %c0_5 = arith.constant 0 : index
    %c0_6 = arith.constant 0 : index
    %4 = vector.load %arg4[%c0_5, %c0_6] : memref<128x128xf32, #tpu.memory_space<vmem>>, vector<128x128xf32>
    %cst = arith.constant dense<0.000000e+00> : vector<8x128xf32>
    %5 = tpu.matmul %1, %4, %cst {dimension_numbers = #tpu.dot_dimension_numbers<[1], [0], [0], [1], [0, 0, 1, 1], [], []>} : vector<8x128xf32>, vector<128x128xf32>, vector<8x128xf32> -> vector<8x128xf32>
    %c0_7 = arith.constant 0 : index
    %c0_8 = arith.constant 0 : index
    %6 = vector.load %arg5[%c0_7, %c0_8] : memref<128x128xf32, #tpu.memory_space<vmem>>, vector<128x128xf32>
    %cst_9 = arith.constant dense<0.000000e+00> : vector<8x128xf32>
    %7 = tpu.matmul %3, %6, %cst_9 {dimension_numbers = #tpu.dot_dimension_numbers<[1], [0], [0], [1], [0, 0, 1, 1], [], []>} : vector<8x128xf32>, vector<128x128xf32>, vector<8x128xf32> -> vector<8x128xf32>
    %c0_10 = arith.constant 0 : index
    %c0_11 = arith.constant 0 : index
    %8 = vector.load %arg6[%c0_10, %c0_11] : memref<128x128xf32, #tpu.memory_space<vmem>>, vector<128x128xf32>
    %cst_12 = arith.constant dense<0.000000e+00> : vector<8x128xf32>
    %9 = tpu.matmul %3, %8, %cst_12 {dimension_numbers = #tpu.dot_dimension_numbers<[1], [0], [0], [1], [0, 0, 1, 1], [], []>} : vector<8x128xf32>, vector<128x128xf32>, vector<8x128xf32> -> vector<8x128xf32>
    %c0_13 = arith.constant 0 : index
    %c0_14 = arith.constant 0 : index
    %c0_15 = arith.constant 0 : index
    %10 = vector.load %arg3[%c0_13, %c0_14, %c0_15] : memref<1x8x8xf32, #tpu.memory_space<vmem>>, vector<1x8x8xf32>
    %11 = vector.shape_cast %10 : vector<1x8x8xf32> to vector<8x8xf32>
    %cst_16 = arith.constant -1.000000e+09 : f32
    %12 = vector.broadcast %cst_16 : f32 to vector<8x8xf32>
    %13 = arith.mulf %11, %12 : vector<8x8xf32>
    %cst_17 = arith.constant 0.000000e+00 : f32
    %14 = vector.broadcast %cst_17 : f32 to vector<8x128xf32>
    %15 = vector.extract_strided_slice %5 {offsets = [0, 0], sizes = [8, 32], strides = [1, 1]} : vector<8x128xf32> to vector<8x32xf32>
    %16 = vector.extract_strided_slice %7 {offsets = [0, 0], sizes = [8, 32], strides = [1, 1]} : vector<8x128xf32> to vector<8x32xf32>
    %17 = vector.extract_strided_slice %9 {offsets = [0, 0], sizes = [8, 32], strides = [1, 1]} : vector<8x128xf32> to vector<8x32xf32>
    %cst_18 = arith.constant dense<0.000000e+00> : vector<8x8xf32>
    %18 = tpu.matmul %15, %16, %cst_18 {dimension_numbers = #tpu.dot_dimension_numbers<[1], [1], [0], [0], [0, 0, 1, 0], [], []>} : vector<8x32xf32>, vector<8x32xf32>, vector<8x8xf32> -> vector<8x8xf32>
    %19 = arith.addf %18, %13 : vector<8x8xf32>
    %cst_19 = arith.constant 0.176776692 : f32
    %20 = vector.broadcast %cst_19 : f32 to vector<8x8xf32>
    %21 = arith.mulf %19, %20 : vector<8x8xf32>
    %cst_20 = arith.constant dense<0xFF800000> : vector<8xf32>
    %22 = vector.multi_reduction <maximumf>, %21, %cst_20 [1] : vector<8x8xf32> to vector<8xf32>
    %23 = vector.shape_cast %22 : vector<8xf32> to vector<8x1xf32>
    %24 = vector.broadcast %23 : vector<8x1xf32> to vector<8x8xf32>
    %25 = arith.subf %21, %24 : vector<8x8xf32>
    %26 = math.exp %25 : vector<8x8xf32>
    %cst_21 = arith.constant dense<0.000000e+00> : vector<8xf32>
    %27 = vector.multi_reduction <add>, %26, %cst_21 [1] : vector<8x8xf32> to vector<8xf32>
    %28 = vector.shape_cast %27 : vector<8xf32> to vector<8x1xf32>
    %29 = vector.broadcast %28 : vector<8x1xf32> to vector<8x8xf32>
    %30 = arith.divf %26, %29 : vector<8x8xf32>
    %c0_22 = arith.constant 0 : index
    %c0_23 = arith.constant 0 : index
    %c0_24 = arith.constant 0 : index
    %c0_25 = arith.constant 0 : index
    %31 = vector.load %arg9[%c0_22, %c0_23, %c0_24, %c0_25] : memref<1x4x8x8xf32, #tpu.memory_space<vmem>>, vector<1x1x8x8xf32>
    %32 = vector.shape_cast %31 : vector<1x1x8x8xf32> to vector<8x8xf32>
    %33 = vector.shape_cast %30 : vector<8x8xf32> to vector<1x1x8x8xf32>
    tpu.vector_store %arg9[%c0_22, %c0_23, %c0_24, %c0_25], %33 {strides = array<i32>} : memref<1x4x8x8xf32, #tpu.memory_space<vmem>>, vector<1x1x8x8xf32>,
    %cst_26 = arith.constant dense<0.000000e+00> : vector<8x32xf32>
    %34 = tpu.matmul %30, %17, %cst_26 {dimension_numbers = #tpu.dot_dimension_numbers<[1], [0], [0], [1], [0, 0, 1, 1], [], []>} : vector<8x8xf32>, vector<8x32xf32>, vector<8x32xf32> -> vector<8x32xf32>
    %c0_27 = arith.constant 0 : index
    %c0_28 = arith.constant 0 : index
    %35 = vector.load %arg7[%c0_27, %c0_28] : memref<128x128xf32, #tpu.memory_space<vmem>>, vector<32x128xf32>
    %cst_29 = arith.constant dense<0.000000e+00> : vector<8x128xf32>
    %36 = tpu.matmul %34, %35, %cst_29 {dimension_numbers = #tpu.dot_dimension_numbers<[1], [0], [0], [1], [0, 0, 1, 1], [], []>} : vector<8x32xf32>, vector<32x128xf32>, vector<8x128xf32> -> vector<8x128xf32>
    %37 = arith.addf %14, %36 : vector<8x128xf32>
    %38 = vector.extract_strided_slice %5 {offsets = [0, 32], sizes = [8, 32], strides = [1, 1]} : vector<8x128xf32> to vector<8x32xf32>
    %39 = vector.extract_strided_slice %7 {offsets = [0, 32], sizes = [8, 32], strides = [1, 1]} : vector<8x128xf32> to vector<8x32xf32>
    %40 = vector.extract_strided_slice %9 {offsets = [0, 32], sizes = [8, 32], strides = [1, 1]} : vector<8x128xf32> to vector<8x32xf32>
    %cst_30 = arith.constant dense<0.000000e+00> : vector<8x8xf32>
    %41 = tpu.matmul %38, %39, %cst_30 {dimension_numbers = #tpu.dot_dimension_numbers<[1], [1], [0], [0], [0, 0, 1, 0], [], []>} : vector<8x32xf32>, vector<8x32xf32>, vector<8x8xf32> -> vector<8x8xf32>
    %42 = arith.addf %41, %13 : vector<8x8xf32>
    %cst_31 = arith.constant 0.176776692 : f32
    %43 = vector.broadcast %cst_31 : f32 to vector<8x8xf32>
    %44 = arith.mulf %42, %43 : vector<8x8xf32>
    %cst_32 = arith.constant dense<0xFF800000> : vector<8xf32>
    %45 = vector.multi_reduction <maximumf>, %44, %cst_32 [1] : vector<8x8xf32> to vector<8xf32>
    %46 = vector.shape_cast %45 : vector<8xf32> to vector<8x1xf32>
    %47 = vector.broadcast %46 : vector<8x1xf32> to vector<8x8xf32>
    %48 = arith.subf %44, %47 : vector<8x8xf32>
    %49 = math.exp %48 : vector<8x8xf32>
    %cst_33 = arith.constant dense<0.000000e+00> : vector<8xf32>
    %50 = vector.multi_reduction <add>, %49, %cst_33 [1] : vector<8x8xf32> to vector<8xf32>
    %51 = vector.shape_cast %50 : vector<8xf32> to vector<8x1xf32>
    %52 = vector.broadcast %51 : vector<8x1xf32> to vector<8x8xf32>
    %53 = arith.divf %49, %52 : vector<8x8xf32>
    %c0_34 = arith.constant 0 : index
    %c1 = arith.constant 1 : index
    %c0_35 = arith.constant 0 : index
    %c0_36 = arith.constant 0 : index
    %54 = vector.load %arg9[%c0_34, %c1, %c0_35, %c0_36] : memref<1x4x8x8xf32, #tpu.memory_space<vmem>>, vector<1x1x8x8xf32>
    %55 = vector.shape_cast %54 : vector<1x1x8x8xf32> to vector<8x8xf32>
    %56 = vector.shape_cast %53 : vector<8x8xf32> to vector<1x1x8x8xf32>
    tpu.vector_store %arg9[%c0_34, %c1, %c0_35, %c0_36], %56 {strides = array<i32>} : memref<1x4x8x8xf32, #tpu.memory_space<vmem>>, vector<1x1x8x8xf32>,
    %cst_37 = arith.constant dense<0.000000e+00> : vector<8x32xf32>
    %57 = tpu.matmul %53, %40, %cst_37 {dimension_numbers = #tpu.dot_dimension_numbers<[1], [0], [0], [1], [0, 0, 1, 1], [], []>} : vector<8x8xf32>, vector<8x32xf32>, vector<8x32xf32> -> vector<8x32xf32>
    %c32 = arith.constant 32 : index
    %c0_38 = arith.constant 0 : index
    %58 = vector.load %arg7[%c32, %c0_38] : memref<128x128xf32, #tpu.memory_space<vmem>>, vector<32x128xf32>
    %cst_39 = arith.constant dense<0.000000e+00> : vector<8x128xf32>
    %59 = tpu.matmul %57, %58, %cst_39 {dimension_numbers = #tpu.dot_dimension_numbers<[1], [0], [0], [1], [0, 0, 1, 1], [], []>} : vector<8x32xf32>, vector<32x128xf32>, vector<8x128xf32> -> vector<8x128xf32>
    %60 = arith.addf %37, %59 : vector<8x128xf32>
    %61 = vector.extract_strided_slice %5 {offsets = [0, 64], sizes = [8, 32], strides = [1, 1]} : vector<8x128xf32> to vector<8x32xf32>
    %62 = vector.extract_strided_slice %7 {offsets = [0, 64], sizes = [8, 32], strides = [1, 1]} : vector<8x128xf32> to vector<8x32xf32>
    %63 = vector.extract_strided_slice %9 {offsets = [0, 64], sizes = [8, 32], strides = [1, 1]} : vector<8x128xf32> to vector<8x32xf32>
    %cst_40 = arith.constant dense<0.000000e+00> : vector<8x8xf32>
    %64 = tpu.matmul %61, %62, %cst_40 {dimension_numbers = #tpu.dot_dimension_numbers<[1], [1], [0], [0], [0, 0, 1, 0], [], []>} : vector<8x32xf32>, vector<8x32xf32>, vector<8x8xf32> -> vector<8x8xf32>
    %65 = arith.addf %64, %13 : vector<8x8xf32>
    %cst_41 = arith.constant 0.176776692 : f32
    %66 = vector.broadcast %cst_41 : f32 to vector<8x8xf32>
    %67 = arith.mulf %65, %66 : vector<8x8xf32>
    %cst_42 = arith.constant dense<0xFF800000> : vector<8xf32>
    %68 = vector.multi_reduction <maximumf>, %67, %cst_42 [1] : vector<8x8xf32> to vector<8xf32>
    %69 = vector.shape_cast %68 : vector<8xf32> to vector<8x1xf32>
    %70 = vector.broadcast %69 : vector<8x1xf32> to vector<8x8xf32>
    %71 = arith.subf %67, %70 : vector<8x8xf32>
    %72 = math.exp %71 : vector<8x8xf32>
    %cst_43 = arith.constant dense<0.000000e+00> : vector<8xf32>
    %73 = vector.multi_reduction <add>, %72, %cst_43 [1] : vector<8x8xf32> to vector<8xf32>
    %74 = vector.shape_cast %73 : vector<8xf32> to vector<8x1xf32>
    %75 = vector.broadcast %74 : vector<8x1xf32> to vector<8x8xf32>
    %76 = arith.divf %72, %75 : vector<8x8xf32>
    %c0_44 = arith.constant 0 : index
    %c2 = arith.constant 2 : index
    %c0_45 = arith.constant 0 : index
    %c0_46 = arith.constant 0 : index
    %77 = vector.load %arg9[%c0_44, %c2, %c0_45, %c0_46] : memref<1x4x8x8xf32, #tpu.memory_space<vmem>>, vector<1x1x8x8xf32>
    %78 = vector.shape_cast %77 : vector<1x1x8x8xf32> to vector<8x8xf32>
    %79 = vector.shape_cast %76 : vector<8x8xf32> to vector<1x1x8x8xf32>
    tpu.vector_store %arg9[%c0_44, %c2, %c0_45, %c0_46], %79 {strides = array<i32>} : memref<1x4x8x8xf32, #tpu.memory_space<vmem>>, vector<1x1x8x8xf32>,
    %cst_47 = arith.constant dense<0.000000e+00> : vector<8x32xf32>
    %80 = tpu.matmul %76, %63, %cst_47 {dimension_numbers = #tpu.dot_dimension_numbers<[1], [0], [0], [1], [0, 0, 1, 1], [], []>} : vector<8x8xf32>, vector<8x32xf32>, vector<8x32xf32> -> vector<8x32xf32>
    %c64 = arith.constant 64 : index
    %c0_48 = arith.constant 0 : index
    %81 = vector.load %arg7[%c64, %c0_48] : memref<128x128xf32, #tpu.memory_space<vmem>>, vector<32x128xf32>
    %cst_49 = arith.constant dense<0.000000e+00> : vector<8x128xf32>
    %82 = tpu.matmul %80, %81, %cst_49 {dimension_numbers = #tpu.dot_dimension_numbers<[1], [0], [0], [1], [0, 0, 1, 1], [], []>} : vector<8x32xf32>, vector<32x128xf32>, vector<8x128xf32> -> vector<8x128xf32>
    %83 = arith.addf %60, %82 : vector<8x128xf32>
    %84 = vector.extract_strided_slice %5 {offsets = [0, 96], sizes = [8, 32], strides = [1, 1]} : vector<8x128xf32> to vector<8x32xf32>
    %85 = vector.extract_strided_slice %7 {offsets = [0, 96], sizes = [8, 32], strides = [1, 1]} : vector<8x128xf32> to vector<8x32xf32>
    %86 = vector.extract_strided_slice %9 {offsets = [0, 96], sizes = [8, 32], strides = [1, 1]} : vector<8x128xf32> to vector<8x32xf32>
    %cst_50 = arith.constant dense<0.000000e+00> : vector<8x8xf32>
    %87 = tpu.matmul %84, %85, %cst_50 {dimension_numbers = #tpu.dot_dimension_numbers<[1], [1], [0], [0], [0, 0, 1, 0], [], []>} : vector<8x32xf32>, vector<8x32xf32>, vector<8x8xf32> -> vector<8x8xf32>
    %88 = arith.addf %87, %13 : vector<8x8xf32>
    %cst_51 = arith.constant 0.176776692 : f32
    %89 = vector.broadcast %cst_51 : f32 to vector<8x8xf32>
    %90 = arith.mulf %88, %89 : vector<8x8xf32>
    %cst_52 = arith.constant dense<0xFF800000> : vector<8xf32>
    %91 = vector.multi_reduction <maximumf>, %90, %cst_52 [1] : vector<8x8xf32> to vector<8xf32>
    %92 = vector.shape_cast %91 : vector<8xf32> to vector<8x1xf32>
    %93 = vector.broadcast %92 : vector<8x1xf32> to vector<8x8xf32>
    %94 = arith.subf %90, %93 : vector<8x8xf32>
    %95 = math.exp %94 : vector<8x8xf32>
    %cst_53 = arith.constant dense<0.000000e+00> : vector<8xf32>
    %96 = vector.multi_reduction <add>, %95, %cst_53 [1] : vector<8x8xf32> to vector<8xf32>
    %97 = vector.shape_cast %96 : vector<8xf32> to vector<8x1xf32>
    %98 = vector.broadcast %97 : vector<8x1xf32> to vector<8x8xf32>
    %99 = arith.divf %95, %98 : vector<8x8xf32>
    %c0_54 = arith.constant 0 : index
    %c3 = arith.constant 3 : index
    %c0_55 = arith.constant 0 : index
    %c0_56 = arith.constant 0 : index
    %100 = vector.load %arg9[%c0_54, %c3, %c0_55, %c0_56] : memref<1x4x8x8xf32, #tpu.memory_space<vmem>>, vector<1x1x8x8xf32>
    %101 = vector.shape_cast %100 : vector<1x1x8x8xf32> to vector<8x8xf32>
    %102 = vector.shape_cast %99 : vector<8x8xf32> to vector<1x1x8x8xf32>
    tpu.vector_store %arg9[%c0_54, %c3, %c0_55, %c0_56], %102 {strides = array<i32>} : memref<1x4x8x8xf32, #tpu.memory_space<vmem>>, vector<1x1x8x8xf32>,
    %cst_57 = arith.constant dense<0.000000e+00> : vector<8x32xf32>
    %103 = tpu.matmul %99, %86, %cst_57 {dimension_numbers = #tpu.dot_dimension_numbers<[1], [0], [0], [1], [0, 0, 1, 1], [], []>} : vector<8x8xf32>, vector<8x32xf32>, vector<8x32xf32> -> vector<8x32xf32>
    %c96 = arith.constant 96 : index
    %c0_58 = arith.constant 0 : index
    %104 = vector.load %arg7[%c96, %c0_58] : memref<128x128xf32, #tpu.memory_space<vmem>>, vector<32x128xf32>
    %cst_59 = arith.constant dense<0.000000e+00> : vector<8x128xf32>
    %105 = tpu.matmul %103, %104, %cst_59 {dimension_numbers = #tpu.dot_dimension_numbers<[1], [0], [0], [1], [0, 0, 1, 1], [], []>} : vector<8x32xf32>, vector<32x128xf32>, vector<8x128xf32> -> vector<8x128xf32>
    %106 = arith.addf %83, %105 : vector<8x128xf32>
    %c0_60 = arith.constant 0 : index
    %c0_61 = arith.constant 0 : index
    %c0_62 = arith.constant 0 : index
    %107 = vector.load %arg8[%c0_60, %c0_61, %c0_62] : memref<1x8x128xf32, #tpu.memory_space<vmem>>, vector<1x8x128xf32>
    %108 = vector.shape_cast %107 : vector<1x8x128xf32> to vector<8x128xf32>
    %109 = vector.shape_cast %106 : vector<8x128xf32> to vector<1x8x128xf32>
    tpu.vector_store %arg8[%c0_60, %c0_61, %c0_62], %109 {strides = array<i32>} : memref<1x8x128xf32, #tpu.memory_space<vmem>>, vector<1x8x128xf32>,
    return
  }
  func.func @transform_0(%arg0: i32) -> (i32, i32, i32) {
    %c0_i32 = arith.constant 0 : i32
    %c0_i32_0 = arith.constant 0 : i32
    %c0_i32_1 = arith.constant 0 : i32
    return %arg0, %c0_i32, %c0_i32_0 : i32, i32, i32
  }
  func.func @transform_1(%arg0: i32) -> (i32, i32, i32) {
    %c0_i32 = arith.constant 0 : i32
    %c0_i32_0 = arith.constant 0 : i32
    %c0_i32_1 = arith.constant 0 : i32
    return %arg0, %c0_i32, %c0_i32_0 : i32, i32, i32
  }
  func.func @transform_2(%arg0: i32) -> (i32, i32, i32) {
    %c0_i32 = arith.constant 0 : i32
    %c0_i32_0 = arith.constant 0 : i32
    %c0_i32_1 = arith.constant 0 : i32
    return %arg0, %c0_i32, %c0_i32_0 : i32, i32, i32
  }
  func.func @transform_3(%arg0: i32) -> (i32, i32) {
    %c0_i32 = arith.constant 0 : i32
    %c0_i32_0 = arith.constant 0 : i32
    %c0_i32_1 = arith.constant 0 : i32
    return %c0_i32, %c0_i32_0 : i32, i32
  }
  func.func @transform_4(%arg0: i32) -> (i32, i32) {
    %c0_i32 = arith.constant 0 : i32
    %c0_i32_0 = arith.constant 0 : i32
    %c0_i32_1 = arith.constant 0 : i32
    return %c0_i32, %c0_i32_0 : i32, i32
  }
  func.func @transform_5(%arg0: i32) -> (i32, i32) {
    %c0_i32 = arith.constant 0 : i32
    %c0_i32_0 = arith.constant 0 : i32
    %c0_i32_1 = arith.constant 0 : i32
    return %c0_i32, %c0_i32_0 : i32, i32
  }
  func.func @transform_6(%arg0: i32) -> (i32, i32) {
    %c0_i32 = arith.constant 0 : i32
    %c0_i32_0 = arith.constant 0 : i32
    %c0_i32_1 = arith.constant 0 : i32
    return %c0_i32, %c0_i32_0 : i32, i32
  }
  func.func @transform_7(%arg0: i32) -> (i32, i32, i32) {
    %c0_i32 = arith.constant 0 : i32
    %c0_i32_0 = arith.constant 0 : i32
    %c0_i32_1 = arith.constant 0 : i32
    return %arg0, %c0_i32, %c0_i32_0 : i32, i32, i32
  }
  func.func @transform_8(%arg0: i32) -> (i32, i32, i32, i32) {
    %c0_i32 = arith.constant 0 : i32
    %c0_i32_0 = arith.constant 0 : i32
    %c0_i32_1 = arith.constant 0 : i32
    %c0_i32_2 = arith.constant 0 : i32
    return %arg0, %c0_i32, %c0_i32_0, %c0_i32_1 : i32, i32, i32, i32
  }
}

</mosaic_0001>

<bundles_post_ra>
// kernel: tpu_custom_call.1
= control target key start
LH: loop header
LB: loop body
LE: loop exit
PB: predicated region body
PF: predicated region fallthrough
CT: control target
= control target key end

     0   :  { %s3381_s0 = inlined_call_operand.hbm [shape: f32[2,8,128], index: 0, kind: input, shape index: {}]   ;;  %s3382_s1 = inlined_call_operand.hbm [shape: f32[2,8,128], index: 1, kind: input, shape index: {}]   ;;  %s3383_s2 = inlined_call_operand.hbm [shape: f32[2,8,8], index: 2, kind: input, shape index: {}]   ;;  %s3384_s3 = inlined_call_operand.hbm [shape: f32[128,128], index: 3, kind: input, shape index: {}]   ;;  %s3385_s4 = inlined_call_operand.hbm [shape: f32[128,128], index: 4, kind: input, shape index: {}]   ;;  %s3386_s5 = inlined_call_operand.hbm [shape: f32[128,128], index: 5, kind: input, shape index: {}]   ;;  %s3387_s6 = inlined_call_operand.hbm [shape: f32[128,128], index: 6, kind: input, shape index: {}]   ;;  %s3388_s7 = inlined_call_operand.hbm [shape: f32[2,8,128], index: 7, kind: output, shape index: {0}]   ;;  %s3389_s8 = inlined_call_operand.hbm [shape: f32[2,4,8,8], index: 8, kind: output, shape index: {1}]  }
   0x1   :  { %3414 = sst [smem:[#allocation28_spill]] %s3382_s1 }
   0x2   :  { %3415 = sst [smem:[#allocation29_spill]] %s3384_s3 }
   0x3   :  { %3416 = sst [smem:[#allocation30_spill]] %s3386_s5 }
   0x4   :  { %3417 = sst [smem:[#allocation31_spill]] %s3388_s7 }
   0x5   :  { %3418 = sst [smem:[#allocation32_spill]] %s3389_s8 }
   0x6   :  { %14 = vsyncpa [#allocation3], 0 }
   0x7   :  { %16 = vsyncpa [#allocation3 + $0x1], 0 }
   0x8   :  { %17 = vsyncpa [#allocation6], 0 }
   0x9   :  { %19 = vsyncpa [#allocation6 + $0x1], 0 }
   0xa   :  { %20 = vsyncpa [#allocation9], 0 }
   0xb   :  { %21 = vsyncpa [#allocation12], 0 }
   0xc   :  { %22 = vsyncpa [#allocation4], 0 }
   0xd   :  { %24 = vsyncpa [#allocation4 + $0x1], 0 }
   0xe   :  { %25 = vsyncpa [#allocation16], 0 }
   0xf   :  { %27 = vsyncpa [#allocation16 + $0x1], 0  ;;  %s2855_s27 = smov 0   ;;  %s2857_s28 = smov 0  }
  0x10   :  { %s2859_s29 = smov 0   ;;  %s2861_s30 = smov 0  }
  0x11 LB: > { %3419 = sst [smem:[#allocation23_spill]] %s2777_s27  ;;  %s2791_s9 = smov [#allocation8]   ;;  %s2789_s30 = sphi %s2861_s30, %s3458_s30   ;;  %s2785_s29 = sphi %s2859_s29, %s3462_s29   ;;  %s2781_s28 = sphi %s2857_s28, %s3461_s28   ;;  %s2777_s27 = sphi %s2855_s27, %s3460_s27  }
  0x12   : > { %3420 = sst [smem:[#allocation24_spill]] %s2789_s30  ;;  %s264_s10 = sshll.u32 %s2791_s9, 4  ;;  %s2881_s10 = int_to_ptr.vmem [resolvable:$true] %s264_s10 }
  0x13   : > { %s2876_s11 = sadd.s32 4294967295, %s2789_s30   ;;  %p1922_p0 = scmp.ge.s32.totalorder %s2789_s30, 1 }
  0x14   : > { %p3400_p1 = scmp.eq.s32.totalorder %s2876_s11, 0  ;;  %p252_p2 = scmp.lt.s32.totalorder %s2789_s30, 3 }
  0x15   : > { %s2792_s13 = smov [#allocation11]   ;;  %s3423_s3 = sld [smem:[#allocation29_spill]] }
  0x16   : > { %p2883_p3 = pnand %p1922_p0, %p252_p2  ;;  %s290_s14 = sshll.u32 %s2792_s13, 4  ;;  %s2896_s14 = int_to_ptr.vmem [resolvable:$true] %s290_s14 }
  0x18   : > { %s3421_s12 = scalar_select %p2883_p3, 1, 0 }
  0x19   : > { %p2375_p5 = pneg %p2883_p3 }
  0x1b   : > { %p2892_p6 = pnand %p2375_p5, %p3400_p1  ;;  %s2477_s18 = scalar_lea.hbm %s3423_s3, 2048 }
  0x1c   : > { %p2478_p7 = scmp.ne.s32.totalorder %s3423_s3, %s2477_s18  ;;  %p2484_p11 = scmp.lt.u32.totalorder %s2477_s18, %s3423_s3 }
  0x1d   : > { %s3422_s15 = scalar_select %p2892_p6, 1, 0 }
  0x1e   : > { %p2906_p8 = pneg %p2892_p6 }
  0x20   : > { %s3424_s21 = scalar_select %p2906_p8, 1, 0 }
  0x21   : > { %p2480_p9 = pnand %p2906_p8, %p2478_p7 }
  0x23   : > { %p2481_p10 = pneg %p2480_p9 }
  0x25   : > { %p2486_p12 = pnand %p2484_p11, %p2481_p10 }
  0x27   : > { %2489 = shalt.err (!%p2486_p12)
}
  0x28   : > { %s2490_s24 = scalar_lea.vmem %s2881_s10, 2048  ;;  %p2498_p5 = scmp.lt.s32.totalorder %s2881_s10, %s2881_s10 }
  0x29   : > { %p2491_p13 = scmp.ne.s32.totalorder %s2881_s10, %s2490_s24  ;;  %p2499_p4 = scmp.lt.s32.totalorder %s2490_s24, %s2490_s24 }
  0x2b   : > { %p2493_p0 = pnand %p2491_p13, %p2906_p8  ;;  %p2500_p7 = por %p2499_p4, %p2498_p5 }
  0x2d   : > { %p2494_p2 = pneg %p2493_p0 }
  0x2f   : > { %p2501_p9 = pnand %p2500_p7, %p2494_p2 }
  0x31   : > { %2504 = shalt.err (!%p2501_p9)
}
  0x32   : > { %s3391_s25 = smov 128   ;;  %s3394_s26 = smov 8  }
  0x33   : > { %2378 = dma.hbm_to_vmem [thread:$0]  (!%p2892_p6), %s3423_s3, 2048, %s2881_s10, [#allocation9], %s3391_s25, %s3391_s25, %s3394_s26  }
  0x34   : > { %s3425_s5 = sld [smem:[#allocation30_spill]] }
  0x3a   : > { %s2505_s18 = scalar_lea.hbm %s3425_s5, 2048 }
  0x3b   : > { %p2506_p4 = scmp.ne.s32.totalorder %s3425_s5, %s2505_s18  ;;  %p2512_p12 = scmp.lt.u32.totalorder %s2505_s18, %s3425_s5 }
  0x3d   : > { %p2508_p10 = pnand %p2506_p4, %p2906_p8 }
  0x3f   : > { %p2509_p11 = pneg %p2508_p10 }
  0x41   : > { %p2514_p13 = pnand %p2512_p12, %p2509_p11 }
  0x43   : > { %2517 = shalt.err (!%p2514_p13)
}
  0x44   : > { %s2518_s10 = scalar_lea.vmem %s2896_s14, 2048  ;;  %p2526_p7 = scmp.lt.s32.totalorder %s2896_s14, %s2896_s14 }
  0x45   : > { %p2519_p0 = scmp.ne.s32.totalorder %s2896_s14, %s2518_s10  ;;  %p2527_p9 = scmp.lt.s32.totalorder %s2518_s10, %s2518_s10 }
  0x47   : > { %p2521_p2 = pnand %p2519_p0, %p2906_p8  ;;  %p2528_p4 = por %p2527_p9, %p2526_p7 }
  0x49   : > { %p2522_p5 = pneg %p2521_p2 }
  0x4b   : > { %p2529_p10 = pnand %p2528_p4, %p2522_p5 }
  0x4d   : > { %2532 = shalt.err (!%p2529_p10)
}
  0x4e   : > { %2384 = dma.hbm_to_vmem [thread:$0]  (!%p2892_p6), %s3425_s5, 2048, %s2896_s14, [#allocation12], %s3391_s25, %s3391_s25, %s3394_s26  }
  0x4f   : > { %s1921_s13 = sadd.s32 4294967294, %s2789_s30   ;;  %s2958_s16 = sadd.s32 1, %s2789_s30  }
  0x50   : > { %3426 = sst [smem:[#allocation25_spill]] %s2958_s16  ;;  %s37_s17 = ssub.s32 %s2789_s30, %s2958_s16 }
  0x51   : > { %s40_s18 = sadd.s32 1, %s2785_s29  ;;  %p38_p11 = scmp.eq.s32.totalorder %s37_s17, 0 }
  0x52   : > { %p47_p12 = scmp.ne.s32.totalorder %s2785_s29, %s2781_s28  ;;  %p48_p13 = scmp.eq.s32.totalorder %s2789_s30, 0 }
  0x53   : > { %p53_p0 = scmp.ne.s32.totalorder %s2781_s28, %s2777_s27  ;;  %p213_p7 = scmp.eq.s32.totalorder %s2876_s11, 1 }
  0x54   : > { %s2969_s19 = scalar_select %p38_p11, %s2785_s29, %s40_s18  }
  0x55   : > { %p49_p2 = por %p48_p13, %p47_p12  ;;  %p2973_p5 = por %p3400_p1, %p53_p0 }
  0x56   : > { %3427 = sst [smem:[#allocation26_spill]] %s2969_s19  ;;  %p219_p9 = scmp.eq.s32.totalorder %s1921_s13, 1 }
  0x57   : > { %s3428_s20 = scalar_select %p2973_p5, 1, 0 }
  0x58   : > { %p2409_p4 = scmp.lt.s32.totalorder %s2789_s30, 2  ;;  %s3393_s14 = sand.u32 1, %s2785_s29  }
  0x59   : > { %p2980_p10 = por %p213_p7, %p47_p12  ;;  %p2984_p3 = por %p219_p9, %p53_p0 }
  0x5a   : > { %s2990_s10 = sshll.u32 %s3393_s14, 3  ;;  %s2993_s24 = sshll.u32 %s2789_s30, 7 }
  0x5b   : > { %s3429_s22 = scalar_select %p2980_p10, 1, 0 }
  0x5c   : > { %s3430_s23 = scalar_select %p2984_p3, 1, 0 }
  0x5d   : > { %p2995_p11 = pnand %p2409_p4, %p49_p2  ;;  %s335_s13 = sand.u32 1, %s2789_s30  }
  0x5e   : > { %3431 = sst [smem:[#allocation27_spill]] %s3430_s23  ;;  %s3433_s1 = sld [smem:[#allocation28_spill]] }
  0x5f   : > { %s3432_s9 = scalar_select %p2995_p11, 1, 0 }
  0x60   : > { %s339_s14 = scalar_lea.vmem [#allocation5], %s2990_s10  ;;  %s2795_s3 = smov [#allocation10]  }
  0x61   : > { %s346_s26 = sshll.u32 %s339_s14, 4  ;;  %s3009_s5 = sshll.u32 %s2795_s3, 4  ;;  %s3007_s26 = int_to_ptr.vmem [resolvable:$true] %s346_s26  ;;  %s278_s5 = int_to_ptr.vmem [resolvable:$true] %s3009_s5 }
  0x62   : > { %s3011_s19 = scalar_lea.sflag [#allocation6], %s335_s13  ;;  %p3017_p13 = pneg %p2995_p11 }
  0x64   : > { %s3004_s25 = scalar_lea.hbm %s3433_s1, %s2993_s24  ;;  %s2538_s30 = scalar_lea.hbm %s3433_s1, 256 }
  0x65   : > { %s2533_s16 = scalar_lea.hbm %s3004_s25, 128  ;;  %p2539_p7 = scmp.lt.u32.totalorder %s3004_s25, %s3433_s1 }
  0x66   : > { %p2534_p12 = scmp.ne.s32.totalorder %s3004_s25, %s2533_s16  ;;  %p2540_p9 = scmp.lt.u32.totalorder %s2538_s30, %s2533_s16 }
  0x67   : > { %s3434_s17 = scalar_select %p3017_p13, 1, 0 }
  0x68   : > { %p2536_p0 = pnand %p3017_p13, %p2534_p12  ;;  %p2541_p4 = por %p2540_p9, %p2539_p7 }
  0x69   : > { %p2542_p1 = scmp.lt.u32.totalorder %s2533_s16, %s3004_s25 }
  0x6a   : > { %p2537_p2 = pneg %p2536_p0 }
  0x6b   : > { %p2543_p3 = por %p2542_p1, %p2541_p4 }
  0x6d   : > { %p2544_p10 = pnand %p2543_p3, %p2537_p2 }
  0x6f   : > { %2547 = shalt.err (!%p2544_p10)
}
  0x70   : > { %s2548_s13 = scalar_lea.vmem %s3007_s26, 128  ;;  %s2796_s18 = smov [#allocation5]  }
  0x71   : > { %p2549_p12 = scmp.ne.s32.totalorder %s3007_s26, %s2548_s13  ;;  %s2553_s14 = sshll.u32 %s2796_s18, 4  ;;  %s2554_s14 = int_to_ptr.vmem [resolvable:$false] %s2553_s14 }
  0x72   : > { %s2555_s23 = scalar_lea.vmem %s2554_s14, 256  ;;  %p2556_p6 = scmp.lt.s32.totalorder %s3007_s26, %s2554_s14 }
  0x73   : > { %p2551_p0 = pnand %p2549_p12, %p3017_p13  ;;  %p2557_p8 = scmp.lt.s32.totalorder %s2555_s23, %s2548_s13 }
  0x75   : > { %p2552_p5 = pneg %p2551_p0  ;;  %p2558_p7 = por %p2557_p8, %p2556_p6 }
  0x77   : > { %p2559_p9 = pnand %p2558_p7, %p2552_p5 }
  0x79   : > { %2562 = shalt.err (!%p2559_p9)
}
  0x7a   : > { %2394 = dma.hbm_to_vmem [thread:$0]  (!%p2995_p11), %s3004_s25, 128, %s3007_s26, %s3011_s19  }
  0x7b   : > { %s2563_s3 = scalar_lea.hbm %s3385_s4, 2048  ;;  %p3435_p3 = scmp.ne.s32.totalorder %s3424_s21, 0 }
  0x7c   : > { %p2564_p1 = scmp.ne.s32.totalorder %s3385_s4, %s2563_s3  ;;  %p2570_p5 = scmp.lt.u32.totalorder %s2563_s3, %s3385_s4 }
  0x7e   : > { %p2566_p6 = pnand %p2564_p1, %p3435_p3 }
  0x80   : > { %p2567_p8 = pneg %p2566_p6 }
  0x82   : > { %p2572_p10 = pnand %p2570_p5, %p2567_p8 }
  0x84   : > { %2575 = shalt.err (!%p2572_p10)
}
  0x85   : > { %s2576_s23 = scalar_lea.vmem %s278_s5, 2048  ;;  %p2584_p0 = scmp.lt.s32.totalorder %s278_s5, %s278_s5 }
  0x86   : > { %p2577_p2 = scmp.ne.s32.totalorder %s278_s5, %s2576_s23  ;;  %p2585_p7 = scmp.lt.s32.totalorder %s2576_s23, %s2576_s23 }
  0x88   : > { %p2579_p4 = pnand %p2577_p2, %p3435_p3  ;;  %p2586_p9 = por %p2585_p7, %p2584_p0 }
  0x8a   : > { %p2580_p12 = pneg %p2579_p4 }
  0x8c   : > { %p2587_p11 = pnand %p2586_p9, %p2580_p12 }
  0x8e   : > { %2590 = shalt.err (!%p2587_p11)
}
  0x8f   : > { %p3436_p1 = scmp.ne.s32.totalorder %s3422_s15, 0  ;;  %s3437_s1 = smov 8  }
  0x90   : > { %s3438_s25 = smov 128   ;;  %s2797_s16 = smov [#allocation13]  }
  0x91   : > { %2381 = dma.hbm_to_vmem [thread:$0]  (!%p3436_p1), %s3385_s4, 2048, %s278_s5, [#allocation9], %s3438_s25, %s3438_s25, %s3437_s1  }
  0x92   : > { %s303_s3 = sshll.u32 %s2797_s16, 4  ;;  %s2591_s14 = scalar_lea.hbm %s3387_s6, 2048  ;;  %s304_s3 = int_to_ptr.vmem [resolvable:$true] %s303_s3 }
  0x93   : > { %p2592_p11 = scmp.ne.s32.totalorder %s3387_s6, %s2591_s14  ;;  %p2598_p5 = scmp.lt.u32.totalorder %s2591_s14, %s3387_s6 }
  0x95   : > { %p2594_p6 = pnand %p2592_p11, %p3435_p3 }
  0x97   : > { %p2595_p8 = pneg %p2594_p6 }
  0x99   : > { %p2600_p10 = pnand %p2598_p5, %p2595_p8 }
  0x9b   : > { %2603 = shalt.err (!%p2600_p10)
}
  0x9c   : > { %s2604_s5 = scalar_lea.vmem %s304_s3, 2048  ;;  %p2612_p0 = scmp.lt.s32.totalorder %s304_s3, %s304_s3 }
  0x9d   : > { %p2605_p2 = scmp.ne.s32.totalorder %s304_s3, %s2604_s5  ;;  %p2613_p7 = scmp.lt.s32.totalorder %s2604_s5, %s2604_s5 }
  0x9f   : > { %p2607_p4 = pnand %p2605_p2, %p3435_p3  ;;  %p2614_p9 = por %p2613_p7, %p2612_p0 }
  0xa1   : > { %p2608_p12 = pneg %p2607_p4 }
  0xa3   : > { %p2615_p13 = pnand %p2614_p9, %p2608_p12 }
  0xa5   : > { %2618 = shalt.err (!%p2615_p13)
}
  0xa6   : > { %2387 = dma.hbm_to_vmem [thread:$0]  (!%p3436_p1), %s3387_s6, 2048, %s304_s3, [#allocation12], %s3438_s25, %s3438_s25, %s3437_s1  }
  0xa7   : > { %s3088_s26 = scalar_lea.hbm %s3381_s0, %s2993_s24  ;;  %s321_s15 = scalar_lea.vmem [#allocation2], %s2990_s10 }
  0xa8   : > { %s328_s30 = sshll.u32 %s321_s15, 4  ;;  %s3439_s16 = sand.u32 1, %s2785_s29   ;;  %s329_s30 = int_to_ptr.vmem [resolvable:$true] %s328_s30 }
  0xa9   : > { %s318_s18 = scalar_lea.sflag [#allocation3], %s3439_s16  ;;  %s2619_s13 = scalar_lea.hbm %s3088_s26, 128 }
  0xaa   : > { %p2620_p13 = scmp.ne.s32.totalorder %s3088_s26, %s2619_s13  ;;  %p3440_p3 = scmp.ne.s32.totalorder %s3434_s17, 0 }
  0xab   : > { %s2624_s3 = scalar_lea.hbm %s3381_s0, 256  ;;  %p2625_p1 = scmp.lt.u32.totalorder %s3088_s26, %s3381_s0 }
  0xac   : > { %p2622_p11 = pnand %p2620_p13, %p3440_p3  ;;  %p2626_p8 = scmp.lt.u32.totalorder %s2624_s3, %s2619_s13 }
  0xad   : > { %p2628_p10 = scmp.lt.u32.totalorder %s2619_s13, %s3088_s26 }
  0xae   : > { %p2623_p6 = pneg %p2622_p11  ;;  %p2627_p5 = por %p2626_p8, %p2625_p1 }
  0xb0   : > { %p2629_p2 = por %p2628_p10, %p2627_p5 }
  0xb2   : > { %p2630_p4 = pnand %p2629_p2, %p2623_p6 }
  0xb4   : > { %2633 = shalt.err (!%p2630_p4)
}
  0xb5   : > { %s2634_s5 = scalar_lea.vmem %s329_s30, 128  ;;  %s2798_s7 = smov [#allocation2]  }
  0xb6   : > { %p2635_p12 = scmp.ne.s32.totalorder %s329_s30, %s2634_s5  ;;  %s2639_s8 = sshll.u32 %s2798_s7, 4  ;;  %s2640_s8 = int_to_ptr.vmem [resolvable:$false] %s2639_s8 }
  0xb7   : > { %s2641_s27 = scalar_lea.vmem %s2640_s8, 256  ;;  %p2642_p9 = scmp.lt.s32.totalorder %s329_s30, %s2640_s8 }
  0xb8   : > { %p2637_p0 = pnand %p2635_p12, %p3440_p3  ;;  %p2643_p13 = scmp.lt.s32.totalorder %s2641_s27, %s2634_s5 }
  0xba   : > { %p2638_p7 = pneg %p2637_p0  ;;  %p2644_p11 = por %p2643_p13, %p2642_p9 }
  0xbc   : > { %p2645_p1 = pnand %p2644_p11, %p2638_p7 }
  0xbe   : > { %2648 = shalt.err (!%p2645_p1)
}
  0xbf   : > { %p3441_p8 = scmp.ne.s32.totalorder %s3432_s9, 0  ;;  %s3114_s16 = scalar_lea.hbm %s3383_s2, %s2993_s24 }
  0xc0   : > { %s357_s13 = scalar_lea.vmem [#allocation7], %s2990_s10  ;;  %s2649_s25 = scalar_lea.hbm %s3114_s16, 128 }
  0xc1   : > { %2391 = dma.hbm_to_vmem [thread:$0]  (!%p3441_p8), %s3088_s26, 128, %s329_s30, %s318_s18  }
  0xc2   : > { %s364_s1 = sshll.u32 %s357_s13, 4  ;;  %p2650_p6 = scmp.ne.s32.totalorder %s3114_s16, %s2649_s25  ;;  %s365_s1 = int_to_ptr.vmem [resolvable:$true] %s364_s1 }
  0xc3   : > { %s2654_s26 = scalar_lea.hbm %s3383_s2, 256  ;;  %p2655_p2 = scmp.lt.u32.totalorder %s3114_s16, %s3383_s2 }
  0xc4   : > { %p2652_p5 = pnand %p2650_p6, %p3440_p3  ;;  %p2656_p4 = scmp.lt.u32.totalorder %s2654_s26, %s2649_s25 }
  0xc5   : > { %p2658_p0 = scmp.lt.u32.totalorder %s2649_s25, %s3114_s16 }
  0xc6   : > { %p2653_p10 = pneg %p2652_p5  ;;  %p2657_p12 = por %p2656_p4, %p2655_p2 }
  0xc8   : > { %p2659_p7 = por %p2658_p0, %p2657_p12 }
  0xca   : > { %p2660_p9 = pnand %p2659_p7, %p2653_p10 }
  0xcc   : > { %2663 = shalt.err (!%p2660_p9)
}
  0xcd   : > { %s2664_s10 = scalar_lea.vmem %s365_s1, 128  ;;  %s2799_s24 = smov [#allocation7]  }
  0xce   : > { %p2665_p13 = scmp.ne.s32.totalorder %s365_s1, %s2664_s10  ;;  %s2669_s23 = sshll.u32 %s2799_s24, 4  ;;  %s2670_s23 = int_to_ptr.vmem [resolvable:$false] %s2669_s23 }
  0xcf   : > { %s2671_s5 = scalar_lea.vmem %s2670_s23, 256  ;;  %p2672_p6 = scmp.lt.s32.totalorder %s365_s1, %s2670_s23 }
  0xd0   : > { %p2667_p11 = pnand %p2665_p13, %p3440_p3  ;;  %p2673_p5 = scmp.lt.s32.totalorder %s2671_s5, %s2664_s10 }
  0xd2   : > { %p2668_p1 = pneg %p2667_p11  ;;  %p2674_p8 = por %p2673_p5, %p2672_p6 }
  0xd4   : > { %p2675_p2 = pnand %p2674_p8, %p2668_p1 }
  0xd6   : > { %2678 = shalt.err (!%p2675_p2)
}
  0xd7   : > { %p3442_p4 = scmp.ne.s32.totalorder %s3432_s9, 0  ;;  %p3443_p10 = scmp.ne.s32.totalorder %s3421_s12, 0 }
  0xd8   : > { %s3138_s17 = sand.u32 (!%p3443_p10), 1, %s2781_s28   ;;  %p3444_p3 = scmp.ne.s32.totalorder (!%p3443_p10), %s3428_s20, 0 }
  0xd9   : > { %2397 = dma.hbm_to_vmem [thread:$0]  (!%p3442_p4), %s3114_s16, 128, %s365_s1, %s3011_s19  }
  0xda   : > { %373 = sbr.rel (%p3443_p10) target bundleno = 2218 (0x8aa), region = 48  ;;  %s3141_s7 = sshll.u32 (!%p3443_p10), %s3138_s17, 3 }
  0xdb   : > { %s376_s8 = scalar_lea.sflag (!%p3443_p10), [#allocation3], %s3138_s17  ;;  %s379_s27 = scalar_lea.vmem (!%p3443_p10), [#allocation2], %s3141_s7 }
  0xe1   : > { %2752 = dma.done.wait (%p3444_p3), %s376_s8, 128  }
  0xe2   : > { %2754 = vsyncadd (%p3444_p3), %s376_s8, 4294967168  ;;  %s384_s12 = sand.u32 1, %s2876_s11   ;;  %s388_s9 = scalar_lea.vmem [#allocation5], %s3141_s7 }
  0xe3   : > { %s385_s19 = scalar_lea.sflag [#allocation6], %s384_s12 }
  0xe4   : > { %2756 = dma.done.wait (%p3444_p3), %s385_s19, 256  }
  0xe5   : > { %2758 = vsyncadd (%p3444_p3), %s385_s19, 4294967040  ;;  %s397_s21 = scalar_lea.vmem [#allocation7], %s3141_s7  ;;  %p3445_p8 = scmp.eq.s32.totalorder %s2876_s11, 0 }
  0xe7   : > { %2760 = dma.done.wait (%p3445_p8), [#allocation9], 4096   ;;  %p3446_p12 = pmov %p3445_p8 }
  0xe8   : > { %p3447_p0 = pmov %p3445_p8 }
  0xe9   : > { %2762 = vsyncadd (%p3446_p12), [#allocation9], 4294963200 }
  0xea   : > { %2764 = dma.done.wait (%p3447_p0), [#allocation12], 4096   ;;  %p3448_p7 = pmov %p3447_p0 }
  0xeb   : > { %v2800_v0 = vmov 0.0|0.0   ;;  %vm2801_vm0 = vmmov 0   ;;  %v2802_v1 = vmov 0.0   ;;  %v549_v2 = vld [vmem:[#allocation10] sm:$0xff]  ;;  %v550_v3 = vld [vmem:[#allocation10 + $0x8] sm:$0xff]  ;;  %v551_v7 = vld [vmem:[#allocation10 + $0x10] sm:$0xff] }
  0xec   : > { %2766 = vsyncadd (%p3448_p7), [#allocation12], 4294963200  ;;  %2271 = vmatprep.subr.bf16.mxu1 %v2800_v0  ;;  %2247 = vmatprep.subr.bf16.mxu0 %v2800_v0  ;;  %v463_v4 = vld [vmem:[#allocation8] sm:$0xff]  ;;  %v2272_v5 = vpack.c.bf16 %v550_v3, %v549_v2  ;;  %v464_v6 = vld [vmem:[#allocation8 + $0x8] sm:$0xff]  ;;  %vm723_vm1 = vcmask 261120   ;;  %s2803_s20 = smov 96  }
  0xed   : > { %2125 = vmatprep.mubr.msk.f32.mxu1 %vm2801_vm0, %v2802_v1  ;;  %2090 = vmatprep.mubr.msk.f32.mxu0 %vm2801_vm0, %v2802_v1  ;;  %v552_v8 = vld [vmem:[#allocation10 + $0x18] sm:$0xff]  ;;  %v2248_v9 = vpack.c.bf16 %v464_v6, %v463_v4  ;;  %v465_v10 = vld [vmem:[#allocation8 + $0x10] sm:$0xff]  ;;  %v553_v14 = vld [vmem:[#allocation10 + $0x20] sm:$0xff]  ;;  %s2804_s15 = smov 64   ;;  %s2805_s16 = smov 32   ;;  %vm801_vm2 = vcmask 64512  }
  0xee   : > { %v466_v11 = vld [vmem:[#allocation8 + $0x18] sm:$0xff]  ;;  %2273 = vmatpush3.bf16.msra.mxu1 %v2272_v5  ;;  %v2275_v12 = vpack.c.bf16 %v552_v8, %v551_v7  ;;  %v554_v15 = vld [vmem:[#allocation10 + $0x28] sm:$0xff]  ;;  %v467_v16 = vld [vmem:[#allocation8 + $0x20] sm:$0xff]  ;;  %s1943_s13 = sshll.u32 %s3138_s17, 5  ;;  %s1970_s25 = sshll.u32 %s2876_s11, 9 }
  0xef   : > { %2249 = vmatpush3.bf16.msra.mxu0 %v2248_v9  ;;  %2274 = vmatprep.subr.bf16.mxu1 %v2800_v0  ;;  %v2251_v13 = vpack.c.bf16 %v466_v11, %v465_v10  ;;  %v468_v17 = vld [vmem:[#allocation8 + $0x28] sm:$0xff]  ;;  %v2278_v18 = vpack.c.bf16 %v554_v15, %v553_v14  ;;  %v555_v20 = vld [vmem:[#allocation10 + $0x30] sm:$0xff]  ;;  %v556_v21 = vld [vmem:[#allocation10 + $0x38] sm:$0xff]  ;;  %s3237_s1 = scalar_lea.vmem [#allocation15], %s1943_s13  ;;  %s3449_s30 = sld [smem:[#allocation32_spill]] }
  0xf0   : > { %2250 = vmatprep.subr.bf16.mxu0 %v2800_v0  ;;  %v2254_v19 = vpack.c.bf16 %v468_v17, %v467_v16  ;;  %v469_v22 = vld [vmem:[#allocation8 + $0x30] sm:$0xff]  ;;  %v470_v23 = vld [vmem:[#allocation8 + $0x38] sm:$0xff]  ;;  %v2281_v24 = vpack.c.bf16 %v556_v21, %v555_v20  ;;  %v557_v26 = vld [vmem:[#allocation10 + $0x40] sm:$0xff]  ;;  %s1735_s3 = sshll.u32 %s3237_s1, 4  ;;  %s1709_s24 = scalar_lea.sflag [#allocation16], %s3138_s17  ;;  %s3306_s3 = int_to_ptr.vmem [resolvable:$true] %s1735_s3 }
  0xf1   : > { %v2257_v25 = vpack.c.bf16 %v470_v23, %v469_v22  ;;  %v558_v27 = vld [vmem:[#allocation10 + $0x48] sm:$0xff]  ;;  %v471_v28 = vld [vmem:[#allocation8 + $0x40] sm:$0xff]  ;;  %v559_v32 = vld [vmem:[#allocation10 + $0x50] sm:$0xff]  ;;  %s2679_s23 = scalar_lea.vmem %s3306_s3, 512  ;;  %p3451_p13 = scmp.ne.s32.totalorder %s3429_s22, 0 }
  0xf2   : > { %2276 = vmatpush3.bf16.msra.mxu1 %v2275_v12  ;;  %v472_v29 = vld [vmem:[#allocation8 + $0x48] sm:$0xff]  ;;  %v2284_v30 = vpack.c.bf16 %v558_v27, %v557_v26  ;;  %v560_v33 = vld [vmem:[#allocation10 + $0x58] sm:$0xff]  ;;  %v473_v34 = vld [vmem:[#allocation8 + $0x50] sm:$0xff]  ;;  %p2680_p9 = scmp.ne.s32.totalorder %s3306_s3, %s2679_s23  ;;  %s2806_s5 = smov [#allocation15]  }
  0xf3   : > { %2252 = vmatpush3.bf16.msra.mxu0 %v2251_v13  ;;  %2277 = vmatprep.subr.bf16.mxu1 %v2800_v0  ;;  %v2260_v31 = vpack.c.bf16 %v472_v29, %v471_v28  ;;  %v474_v35 = vld [vmem:[#allocation8 + $0x58] sm:$0xff]  ;;  %v2287_v36 = vpack.c.bf16 %v560_v33, %v559_v32  ;;  %v561_v38 = vld [vmem:[#allocation10 + $0x60] sm:$0xff]  ;;  %v562_v39 = vld [vmem:[#allocation10 + $0x68] sm:$0xff]  ;;  %s2683_s8 = sshll.u32 %s2806_s5, 4  ;;  %s2684_s8 = int_to_ptr.vmem [resolvable:$false] %s2683_s8 }
  0xf4   : > { %2253 = vmatprep.subr.bf16.mxu0 %v2800_v0  ;;  %v2263_v37 = vpack.c.bf16 %v474_v35, %v473_v34  ;;  %v475_v40 = vld [vmem:[#allocation8 + $0x60] sm:$0xff]  ;;  %v476_v41 = vld [vmem:[#allocation8 + $0x68] sm:$0xff]  ;;  %v2290_v42 = vpack.c.bf16 %v562_v39, %v561_v38  ;;  %v563_v44 = vld [vmem:[#allocation10 + $0x70] sm:$0xff]  ;;  %p2681_p11 = pnand %p2680_p9, %p3451_p13  ;;  %p2686_p6 = scmp.lt.s32.totalorder %s3306_s3, %s2684_s8 }
  0xf5   : > { %v2266_v43 = vpack.c.bf16 %v476_v41, %v475_v40  ;;  %v564_v45 = vld [vmem:[#allocation10 + $0x78] sm:$0xff]  ;;  %v477_v46 = vld [vmem:[#allocation8 + $0x70] sm:$0xff]  ;;  %v635_v50 = vld [vmem:[#allocation11] sm:$0xff]  ;;  %s3450_s18 = smov %s3449_s30  ;;  %s3304_s10 = scalar_lea.hbm %s3449_s30, %s1970_s25 }
  0xf6   : > { %2279 = vmatpush3.bf16.msra.mxu1 %v2278_v18  ;;  %v478_v47 = vld [vmem:[#allocation8 + $0x78] sm:$0xff]  ;;  %v2293_v48 = vpack.c.bf16 %v564_v45, %v563_v44  ;;  %v636_v51 = vld [vmem:[#allocation11 + $0x8] sm:$0xff]  ;;  %v637_v55 = vld [vmem:[#allocation11 + $0x10] sm:$0xff]  ;;  %p2682_p1 = pneg %p2681_p11 }
  0xf7   : > { %2255 = vmatpush3.bf16.msra.mxu0 %v2254_v19  ;;  %2280 = vmatprep.subr.bf16.mxu1 %v2800_v0  ;;  %v2269_v49 = vpack.c.bf16 %v478_v47, %v477_v46  ;;  %v462_v52 = vld [vmem:[%s388_s9] sm:$0xff]  ;;  %v461_v53 = vld [vmem:[%s379_s27] sm:$0xff]  ;;  %v2296_v54 = vpack.c.bf16 %v636_v51, %v635_v50  ;;  %s2685_s27 = scalar_lea.vmem %s2684_s8, 1024 }
  0xf8   : > { %2256 = vmatprep.subr.bf16.mxu0 %v2800_v0  ;;  %v638_v56 = vld [vmem:[#allocation11 + $0x18] sm:$0xff]  ;;  %v639_v58 = vld [vmem:[#allocation11 + $0x20] sm:$0xff]  ;;  %v640_v59 = vld [vmem:[#allocation11 + $0x28] sm:$0xff]  ;;  %p2687_p5 = scmp.lt.s32.totalorder %s2685_s27, %s2679_s23 }
  0xf9   : > { %v2299_v57 = vpack.c.bf16 %v638_v56, %v637_v55  ;;  %v2302_v60 = vpack.c.bf16 %v640_v59, %v639_v58  ;;  %v641_v61 = vld [vmem:[#allocation11 + $0x30] sm:$0xff]  ;;  %v642_v62 = vld [vmem:[#allocation11 + $0x38] sm:$0xff]  ;;  %v643_v2 = vld [vmem:[#allocation11 + $0x40] sm:$0xff] }
  0xfa   : > { %2282 = vmatpush3.bf16.msra.mxu1 %v2281_v24  ;;  %v2305_v63 = vpack.c.bf16 %v642_v62, %v641_v61  ;;  %v644_v3 = vld [vmem:[#allocation11 + $0x48] sm:$0xff]  ;;  %v645_v5 = vld [vmem:[#allocation11 + $0x50] sm:$0xff]  ;;  %v646_v6 = vld [vmem:[#allocation11 + $0x58] sm:$0xff]  ;;  %p2688_p2 = por %p2687_p5, %p2686_p6 }
  0xfb   : > { %2258 = vmatpush3.bf16.msra.mxu0 %v2257_v25  ;;  %2283 = vmatprep.subr.bf16.mxu1 %v2800_v0  ;;  %v2308_v4 = vpack.c.bf16 %v644_v3, %v643_v2  ;;  %v2311_v7 = vpack.c.bf16 %v646_v6, %v645_v5  ;;  %v647_v8 = vld [vmem:[#allocation11 + $0x60] sm:$0xff]  ;;  %v648_v9 = vld [vmem:[#allocation11 + $0x68] sm:$0xff]  ;;  %v649_v11 = vld [vmem:[#allocation11 + $0x70] sm:$0xff] }
  0xfc   : > { %2259 = vmatprep.subr.bf16.mxu0 %v2800_v0  ;;  %v2314_v10 = vpack.c.bf16 %v648_v9, %v647_v8  ;;  %v650_v12 = vld [vmem:[#allocation11 + $0x78] sm:$0xff]  ;;  %p2689_p4 = pnand %p2688_p2, %p2682_p1 }
  0xfd   : > { %v2317_v13 = vpack.c.bf16 %v650_v12, %v649_v11  ;;  %v721_v20 = vld [vmem:[%s397_s21] sm:$0xff] }
  0xfe   : > { %2285 = vmatpush3.bf16.msra.mxu1 %v2284_v30  ;;  %v3220_v21 = vmul.f32 -1e+09, %v721_v20  ;;  %v1063_v20 = vld [vmem:[#allocation13 + $0x38] sm:$0xff] }
  0xff   : > { %2261 = vmatpush3.bf16.msra.mxu0 %v2260_v31  ;;  %2286 = vmatprep.subr.bf16.mxu1 %v2800_v0 }
 0x100   : > { %2262 = vmatprep.subr.bf16.mxu0 %v2800_v0 }
 0x102   : > { %2288 = vmatpush3.bf16.msra.mxu1 %v2287_v36 }
 0x103   : > { %2264 = vmatpush3.bf16.msra.mxu0 %v2263_v37  ;;  %2289 = vmatprep.subr.bf16.mxu1 %v2800_v0 }
 0x104   : > { %2265 = vmatprep.subr.bf16.mxu0 %v2800_v0 }
 0x106   : > { %2291 = vmatpush3.bf16.msra.mxu1 %v2290_v42 }
 0x107   : > { %2267 = vmatpush3.bf16.msra.mxu0 %v2266_v43  ;;  %2292 = vmatprep.subr.bf16.mxu1 %v2800_v0 }
 0x108   : > { %2268 = vmatprep.subr.bf16.mxu0 %v2800_v0 }
 0x10a   : > { %2294 = vmatpush3.bf16.msra.mxu1 %v2293_v48 }
 0x10b   : > { %2270 = vmatpush3.bf16.msra.mxu0 %v2269_v49  ;;  %2168 = vmatprep.subr.mxu1 %v2802_v1 }
 0x10c   : > { %2295 = vmatprep.subr.bf16.mxu0 %v2800_v0 }
 0x10d   : > { %2126 = vmatmul.mubr.f32.vlgmr.msra.gmra.mrb[0].mxu1 %v462_v52 }
 0x10e   : > { %2091 = vmatmul.mubr.f32.vlgmr.msra.gmra.mrb[0].mxu0 %v461_v53  ;;  %2170 = vmatprep.mubr.msk.f32.mxu1 %vm2801_vm0, %v2802_v1 }
 0x10f   : > { %2297 = vmatpush3.bf16.msra.mxu0 %v2296_v54  ;;  %2160 = vmatprep.mubr.msk.f32.mxu0 %vm2801_vm0, %v2802_v1 }
 0x110   : > { %2298 = vmatprep.subr.bf16.mxu0 %v2800_v0 }
 0x113   : > { %2300 = vmatpush3.bf16.msra.mxu0 %v2299_v57 }
 0x114   : > { %2301 = vmatprep.subr.bf16.mxu0 %v2800_v0 }
 0x117   : > { %2303 = vmatpush3.bf16.msra.mxu0 %v2302_v60 }
 0x118   : > { %2304 = vmatprep.subr.bf16.mxu0 %v2800_v0 }
 0x11b   : > { %2306 = vmatpush3.bf16.msra.mxu0 %v2305_v63 }
 0x11c   : > { %2307 = vmatprep.subr.bf16.mxu0 %v2800_v0 }
 0x11f   : > { %2309 = vmatpush3.bf16.msra.mxu0 %v2308_v4 }
 0x120   : > { %2310 = vmatprep.subr.bf16.mxu0 %v2800_v0 }
 0x123   : > { %2312 = vmatpush3.bf16.msra.mxu0 %v2311_v7 }
 0x124   : > { %2313 = vmatprep.subr.bf16.mxu0 %v2800_v0 }
 0x127   : > { %2315 = vmatpush3.bf16.msra.mxu0 %v2314_v10 }
 0x128   : > { %2316 = vmatprep.subr.bf16.mxu0 %v2800_v0 }
 0x12b   : > { %2318 = vmatpush3.bf16.msra.mxu0 %v2317_v13 }
 0x12c   : > { %2163 = vmatprep.subr.mxu0 %v2802_v1 }
 0x12e   : > { %2161 = vmatmul.mubr.f32.vlgmr.msra.gmra.mrb[2].mxu0 %v462_v52 }
 0x12f   : > { %2165 = vmatprep.mubr.msk.f32.mxu0 %vm2801_vm0, %v2802_v1 }
 0x1e0   : > { %v631_v14 = vpop.f32.mrb[0].mxu1 }
 0x1e1   : > { %893 = vrot.lane.b32.xlu1 %v631_v14, %s2803_s20  ;;  %v2127_v15 = vpop.f32.mrb[1].mxu1  ;;  %2164 = vmatpush3.xpose.msk.msra.mxu0 %vm723_vm1, %v631_v14  ;;  %v545_v16 = vpop.f32.mrb[0].mxu0 }
 0x1e2   : > { %v2092_v17 = vpop.f32.mrb[1].mxu0  ;;  %2205 = vmatprep.subr.mxu0 %v2802_v1  ;;  %v1060_v15 = vld [vmem:[#allocation13 + $0x20] sm:$0xff] }
 0x1e3   : > { %v1062_v17 = vld [vmem:[#allocation13 + $0x30] sm:$0xff] }
 0x1e4   : > { %2166 = vmatmul.mubr.msk.f32.vlgmr.msra.gmra.mrb[4].mxu0 %vm723_vm1, %v545_v16 }
 0x1e5   : > { %891 = vrot.lane.b32.xlu1 %v545_v16, %s2803_s20  ;;  %2207 = vmatprep.mubr.msk.f32.mxu0 %vm2801_vm0, %v2802_v1 }
 0x1e9   : > { %1210 = vrot.lane.b32.xlu1 %v545_v16, %s2804_s15 }
 0x1ed   : > { %1458 = vrot.lane.b32.xlu1 %v631_v14, %s2805_s16 }
 0x1f1   : > { %1456 = vrot.lane.b32.xlu1 %v545_v16, %s2805_s16  ;;  %v1061_v16 = vld [vmem:[#allocation13 + $0x28] sm:$0xff] }
 0x201   : > { %v3214_v18 = vpop.f32.mrb[2].mxu0 }
 0x202   : > { %v2162_v19 = vpop.f32.mrb[3].mxu0  ;;  %2169 = vmatpush3.msra.mxu1 %v3214_v18 }
 0x203   : > { %2173 = vmatprep.subr.mxu1 %v2802_v1  ;;  %v2320_v19 = vpack.c.bf16 %v1061_v16, %v1060_v15 }
 0x253   : > { %v894_v32 = vpop.permute.xlu1 %893 }
 0x257   : > { %v892_v33 = vpop.permute.xlu1 %891 }
 0x25b   : > { %v1211_v34 = vpop.permute.xlu1 %1210 }
 0x25f   : > { %v1459_v37 = vpop.permute.xlu1 %1458 }
 0x263   : > { %v1457_v39 = vpop.permute.xlu1 %1456 }
 0x2b7   : > { %v796_v22 = vpop.f32.mrb[4].mxu0 }
 0x2b8   : > { %v797_v23 = vadd.f32 %v796_v22, %v3220_v21  ;;  %v2167_v24 = vpop.f32.mrb[5].mxu0 }
 0x2ba   : > { %v800_v25 = vmul.f32 0.17677669, %v797_v23 }
 0x2bc   : > { %v802_v26 = vsel %vm801_vm2, %v800_v25, -inf }
 0x2bd   : > { %803 = vmax.xlane.f32.xlu0 %v802_v26 }
 0x34a   : > { %v804_v27 = vpop.xlane.xlu0 %803 }
 0x34b   : > { %v805_v28 = vsub.f32 %v800_v25, %v804_v27 }
 0x34d   : > { %v806_v29 = vmul.f32 1.442695, %v805_v28  ;;  %v887_v28 = vld [vmem:[#allocation13] sm:$0xff] }
 0x34f   : > { %2461 = vpow2.f32 %v806_v29  ;;  %v888_v29 = vld [vmem:[#allocation13 + $0x8] sm:$0xff] }
 0x359   : > { %v2462_v30 = vpop.eup %2461 }
 0x35a   : > { %v808_v31 = vsel %vm801_vm2, %v2462_v30, 0.0 }
 0x35b   : > { %809 = vadd.xlane.f32.xlu0 %v808_v31  ;;  %v889_v31 = vld [vmem:[#allocation13 + $0x10] sm:$0xff] }
 0x371   : > { %1212 = vrot.lane.b32.xlu0 %v631_v14, %s2804_s15 }
 0x3e8   : > { %v810_v35 = vpop.xlane.xlu0 %809 }
 0x3e9   : > { %2463 = vrcp.f32 %v810_v35 }
 0x3ec   : > { %v1213_v36 = vpop.permute.xlu0 %1212 }
 0x3ed   : > { %2206 = vmatpush3.xpose.msk.msra.mxu0 %vm723_vm1, %v1213_v36 }
 0x3ee   : > { %2226 = vmatprep.subr.mxu0 %v2802_v1 }
 0x3f0   : > { %2208 = vmatmul.mubr.msk.f32.vlgmr.msra.gmra.mrb[6].mxu0 %vm723_vm1, %v1211_v34 }
 0x3f1   : > { %2227 = vmatpush3.xpose.msk.msra.mxu0 %vm723_vm1, %v1459_v37  ;;  %2228 = vmatprep.mubr.msk.f32.mxu0 %vm2801_vm0, %v2802_v1  ;;  %v1378_v37 = vld [vmem:[#allocation13 + $0x40] sm:$0xff] }
 0x3f2   : > { %2231 = vmatprep.subr.mxu0 %v2802_v1 }
 0x3f3   : > { %v2464_v38 = vpop.eup %2463 }
 0x3f4   : > { %v812_v40 = vmul.f32 %v2464_v38, %v2462_v30  ;;  %2229 = vmatmul.mubr.msk.f32.vlgmr.msra.gmra.mrb[8].mxu0 %vm723_vm1, %v1457_v39  ;;  %v2326_v30 = vpack.c.bf16 %v888_v29, %v887_v28  ;;  %v1379_v38 = vld [vmem:[#allocation13 + $0x48] sm:$0xff]  ;;  %v1380_v39 = vld [vmem:[#allocation13 + $0x50] sm:$0xff] }
 0x3f5   : > { %2233 = vmatprep.mubr.msk.f32.mxu0 %vm2801_vm0, %v2802_v1 }
 0x3f6   : > { %813 = vst.msk [vmem:[%s3237_s1] sm:$0xff] %vm801_vm2, %v812_v40  ;;  %2171 = vmatmul.mubr.msk.f32.vlgmr.msra.gmra.mrb[2].mxu1 %vm801_vm2, %v812_v40  ;;  %v2332_v40 = vpack.c.bf16 %v1379_v38, %v1378_v37 }
 0x3f7   : > { %2174 = vmatpush3.xpose.msk.msra.mxu1 %vm723_vm1, %v894_v32  ;;  %2175 = vmatprep.mubr.msk.f32.mxu1 %vm2801_vm0, %v2802_v1  ;;  %v890_v32 = vld [vmem:[#allocation13 + $0x18] sm:$0xff] }
 0x3f8   : > { %2178 = vmatprep.subr.mxu1 %v2802_v1  ;;  %v2329_v35 = vpack.c.bf16 %v890_v32, %v889_v31 }
 0x3fa   : > { %2176 = vmatmul.mubr.msk.f32.vlgmr.msra.gmra.mrb[4].mxu1 %vm723_vm1, %v892_v33 }
 0x3fb   : > { %2180 = vmatprep.mubr.msk.f32.mxu1 %vm2801_vm0, %v2802_v1 }
 0x4c3   : > { %v1284_v41 = vpop.f32.mrb[6].mxu0 }
 0x4c4   : > { %v2209_v42 = vpop.f32.mrb[7].mxu0  ;;  %v1285_v56 = vadd.f32 %v1284_v41, %v3220_v21  ;;  %v1381_v41 = vld [vmem:[#allocation13 + $0x58] sm:$0xff] }
 0x4c5   : > { %v2335_v42 = vpack.c.bf16 %v1381_v41, %v1380_v39 }
 0x4c6   : > { %v1288_v58 = vmul.f32 0.17677669, %v1285_v56 }
 0x4c7   : > { %v1530_v43 = vpop.f32.mrb[8].mxu0 }
 0x4c8   : > { %v2230_v44 = vpop.f32.mrb[9].mxu0  ;;  %v1531_v59 = vadd.f32 %v1530_v43, %v3220_v21  ;;  %v1289_v62 = vsel %vm801_vm2, %v1288_v58, -inf }
 0x4c9   : > { %v3249_v45 = vpop.f32.mrb[2].mxu1 }
 0x4ca   : > { %v2172_v46 = vpop.f32.mrb[3].mxu1  ;;  %v1534_v61 = vmul.f32 0.17677669, %v1531_v59 }
 0x4cb   : > { %v1625_v46 = vld [vmem:[#allocation13 + $0x68] sm:$0xff] }
 0x4cc   : > { %v1535_v63 = vsel %vm801_vm2, %v1534_v61, -inf }
 0x4cd   : > { %v965_v47 = vpop.f32.mrb[4].mxu1 }
 0x4ce   : > { %v966_v48 = vadd.f32 %v965_v47, %v3220_v21  ;;  %v2177_v49 = vpop.f32.mrb[5].mxu1  ;;  %v2323_v21 = vpack.c.bf16 %v1063_v20, %v1062_v17 }
 0x4cf   : > { %v1627_v49 = vld [vmem:[#allocation13 + $0x78] sm:$0xff] }
 0x4d0   : > { %v969_v50 = vmul.f32 0.17677669, %v966_v48  ;;  %v1626_v48 = vld [vmem:[#allocation13 + $0x70] sm:$0xff] }
 0x4d2   : > { %v970_v51 = vsel %vm801_vm2, %v969_v50, -inf }
 0x4d3   : > { %971 = vmax.xlane.f32.xlu1 %v970_v51 }
 0x4e4   : > { %984 = vrot.lane.b32.xlu1 %v3214_v18, %s2803_s20 }
 0x4e8   : > { %1302 = vrot.lane.b32.xlu1 %v3214_v18, %s2804_s15 }
 0x560   : > { %v972_v52 = vpop.xlane.xlu1 %971 }
 0x561   : > { %v973_v53 = vsub.f32 %v969_v50, %v972_v52  ;;  %v2341_v52 = vpack.c.bf16 %v1627_v49, %v1626_v48 }
 0x563   : > { %v974_v54 = vmul.f32 1.442695, %v973_v53 }
 0x564   : > { %v985_v55 = vpop.permute.xlu1 %984 }
 0x565   : > { %2465 = vpow2.f32 %v974_v54  ;;  %2179 = vmatpush3.msra.mxu1 %v985_v55 }
 0x566   : > { %2319 = vmatprep.subr.bf16.mxu1 %v2800_v0 }
 0x568   : > { %v1303_v36 = vpop.permute.xlu1 %1302 }
 0x56f   : > { %v2466_v57 = vpop.eup %2465 }
 0x570   : > { %v976_v60 = vsel %vm801_vm2, %v2466_v57, 0.0 }
 0x571   : > { %977 = vadd.xlane.f32.xlu0 %v976_v60 }
 0x575   : > { %1290 = vmax.xlane.f32.xlu0 %v1289_v62 }
 0x579   : > { %1536 = vmax.xlane.f32.xlu0 %v1535_v63 }
 0x5fe   : > { %v978_v2 = vpop.xlane.xlu0 %977 }
 0x5ff   : > { %2467 = vrcp.f32 %v978_v2 }
 0x602   : > { %v1291_v3 = vpop.xlane.xlu0 %1290 }
 0x603   : > { %v1292_v4 = vsub.f32 %v1288_v58, %v1291_v3 }
 0x605   : > { %v1293_v5 = vmul.f32 1.442695, %v1292_v4 }
 0x606   : > { %v1537_v6 = vpop.xlane.xlu0 %1536 }
 0x607   : > { %2469 = vpow2.f32 %v1293_v5  ;;  %v1538_v7 = vsub.f32 %v1534_v61, %v1537_v6 }
 0x609   : > { %v2468_v8 = vpop.eup %2467  ;;  %v1539_v9 = vmul.f32 1.442695, %v1538_v7 }
 0x60a   : > { %v980_v10 = vmul.f32 %v2468_v8, %v2466_v57 }
 0x60b   : > { %2471 = vpow2.f32 %v1539_v9 }
 0x60c   : > { %1949 = vst.msk [vmem:[%s3237_s1 + $0x8] sm:$0xff] %vm801_vm2, %v980_v10  ;;  %2181 = vmatmul.mubr.msk.f32.vlgmr.msra.gmra.mrb[6].mxu1 %vm801_vm2, %v980_v10 }
 0x60d   : > { %2191 = vmatprep.mubr.msk.f32.mxu1 %vm2801_vm0, %v2802_v1  ;;  %2321 = vmatpush3.bf16.msra.mxu1 %v2320_v19 }
 0x60e   : > { %2322 = vmatprep.subr.bf16.mxu1 %v2800_v0 }
 0x611   : > { %v2470_v11 = vpop.eup %2469  ;;  %2324 = vmatpush3.bf16.msra.mxu1 %v2323_v21 }
 0x612   : > { %v1295_v12 = vsel %vm801_vm2, %v2470_v11, 0.0  ;;  %2325 = vmatprep.subr.bf16.mxu1 %v2800_v0 }
 0x613   : > { %1296 = vadd.xlane.f32.xlu0 %v1295_v12 }
 0x615   : > { %v2472_v13 = vpop.eup %2471 }
 0x616   : > { %v1541_v14 = vsel %vm801_vm2, %v2472_v13, 0.0 }
 0x617   : > { %1542 = vadd.xlane.f32.xlu0 %v1541_v14 }
 0x62d   : > { %1548 = vrot.lane.b32.xlu0 %v3214_v18, %s2805_s16 }
 0x6a0   : > { %v1297_v22 = vpop.xlane.xlu0 %1296 }
 0x6a1   : > { %2473 = vrcp.f32 %v1297_v22 }
 0x6a4   : > { %v1543_v23 = vpop.xlane.xlu0 %1542 }
 0x6a5   : > { %2475 = vrcp.f32 %v1543_v23 }
 0x6a8   : > { %v1549_v24 = vpop.permute.xlu0 %1548 }
 0x6a9   : > { %2232 = vmatpush3.msra.mxu0 %v1549_v24 }
 0x6ab   : > { %v2474_v18 = vpop.eup %2473 }
 0x6ac   : > { %v1299_v25 = vmul.f32 %v2474_v18, %v2470_v11 }
 0x6ae   : > { %1955 = vst.msk [vmem:[%s3237_s1 + $0x10] sm:$0xff] %vm801_vm2, %v1299_v25 }
 0x6af   : > { %v2476_v26 = vpop.eup %2475 }
 0x6b0   : > { %v1545_v27 = vmul.f32 %v2476_v26, %v2472_v13 }
 0x6b2   : > { %1960 = vst.msk [vmem:[%s3237_s1 + $0x18] sm:$0xff] %vm801_vm2, %v1545_v27  ;;  %2234 = vmatmul.mubr.msk.f32.vlgmr.msra.gmra.mrb[10].mxu0 %vm801_vm2, %v1545_v27 }
 0x6df   : > { %v1056_v33 = vpop.f32.mrb[6].mxu1 }
 0x6e0   : > { %v2182_v34 = vpop.f32.mrb[7].mxu1  ;;  %2192 = vmatmul.mubr.msk.f32.vlgmr.msra.gmra.mrb[8].mxu1 %vm723_vm1, %v1056_v33 }
 0x6e1   : > { %2327 = vmatpush3.bf16.msra.mxu1 %v2326_v30  ;;  %2202 = vmatprep.mubr.msk.f32.mxu1 %vm2801_vm0, %v2802_v1 }
 0x6e2   : > { %2328 = vmatprep.subr.bf16.mxu1 %v2800_v0 }
 0x6e5   : > { %2330 = vmatpush3.bf16.msra.mxu1 %v2329_v35 }
 0x6e6   : > { %2210 = vmatprep.subr.mxu1 %v2802_v1 }
 0x6e8   : > { %2203 = vmatmul.mubr.msk.f32.vlgmr.msra.gmra.mrb[8].mxu1 %vm723_vm1, %v3249_v45  ;;  %v1624_v45 = vld [vmem:[#allocation13 + $0x60] sm:$0xff] }
 0x6e9   : > { %2211 = vmatpush3.msra.mxu1 %v1303_v36  ;;  %2212 = vmatprep.mubr.msk.f32.mxu1 %vm2801_vm0, %v2802_v1  ;;  %v2338_v47 = vpack.c.bf16 %v1625_v46, %v1624_v45 }
 0x6ea   : > { %2331 = vmatprep.subr.bf16.mxu1 %v2800_v0 }
 0x6ec   : > { %2213 = vmatmul.mubr.msk.f32.vlgmr.msra.gmra.mrb[10].mxu1 %vm801_vm2, %v1299_v25 }
 0x6ed   : > { %2223 = vmatprep.mubr.msk.f32.mxu1 %vm2801_vm0, %v2802_v1  ;;  %2333 = vmatpush3.bf16.msra.mxu1 %v2332_v40 }
 0x6ee   : > { %2334 = vmatprep.subr.bf16.mxu1 %v2800_v0 }
 0x6f1   : > { %2336 = vmatpush3.bf16.msra.mxu1 %v2335_v42 }
 0x6f2   : > { %2337 = vmatprep.subr.bf16.mxu1 %v2800_v0 }
 0x785   : > { %v1620_v43 = vpop.f32.mrb[10].mxu0 }
 0x786   : > { %v2235_v44 = vpop.f32.mrb[11].mxu0 }
 0x7bf   : > { %v1374_v50 = vpop.f32.mrb[10].mxu1 }
 0x7c0   : > { %v2214_v51 = vpop.f32.mrb[11].mxu1  ;;  %2224 = vmatmul.mubr.msk.f32.vlgmr.msra.gmra.mrb[8].mxu1 %vm723_vm1, %v1374_v50 }
 0x7c1   : > { %2339 = vmatpush3.bf16.msra.mxu1 %v2338_v47  ;;  %2244 = vmatprep.mubr.msk.f32.mxu1 %vm2801_vm0, %v2802_v1 }
 0x7c2   : > { %2340 = vmatprep.subr.bf16.mxu1 %v2800_v0 }
 0x7c5   : > { %2342 = vmatpush3.bf16.msra.mxu1 %v2341_v52 }
 0x7c8   : > { %2245 = vmatmul.mubr.msk.f32.vlgmr.msra.gmra.mrb[8].mxu1 %vm723_vm1, %v1620_v43 }
 0x7c9   : > { %2692 = shalt.err (!%p2689_p4)
}
 0x7ca   : > { %s2693_s12 = scalar_lea.hbm %s3304_s10, 512  ;;  %s2697_s21 = scalar_lea.hbm %s3450_s18, 1024 }
 0x7cb   : > { %p2694_p10 = scmp.ne.s32.totalorder %s3304_s10, %s2693_s12  ;;  %p2698_p12 = scmp.lt.u32.totalorder %s3304_s10, %s3450_s18 }
 0x7cc   : > { %p2699_p0 = scmp.lt.u32.totalorder %s2697_s21, %s2693_s12  ;;  %p2701_p9 = scmp.lt.u32.totalorder %s2693_s12, %s3304_s10 }
 0x7cd   : > { %p2695_p3 = pnand %p2694_p10, %p3451_p13 }
 0x7ce   : > { %p2700_p7 = por %p2699_p0, %p2698_p12 }
 0x7cf   : > { %p2696_p8 = pneg %p2695_p3 }
 0x7d0   : > { %p2702_p11 = por %p2701_p9, %p2700_p7 }
 0x7d2   : > { %p2703_p1 = pnand %p2702_p11, %p2696_p8 }
 0x7d4   : > { %2706 = shalt.err (!%p2703_p1)
}
 0x7d5   : > { %s2807_s16 = smov 128   ;;  %s2808_s13 = smov 8  }
 0x7d6   : > { %2372 = dma.vmem_to_hbm [thread:$0]  (%p3451_p13), %s3306_s3, 512, %s3304_s10, %s1709_s24, %s2807_s16, %s2807_s16, %s2808_s13  }
 0x7d7   : > { %s453_s1 = scalar_lea.vmem [#allocation14], %s3141_s7  ;;  %s1965_s14 = sshll.u32 %s2876_s11, 7 }
 0x7d8   : > { %s1722_s25 = sshll.u32 %s453_s1, 4  ;;  %s3452_s23 = sld [smem:[#allocation31_spill]]  ;;  %s3334_s25 = int_to_ptr.vmem [resolvable:$true] %s1722_s25 }
 0x7d9   : > { %s1704_s8 = scalar_lea.sflag [#allocation4], %s3138_s17  ;;  %s2707_s27 = scalar_lea.vmem %s3334_s25, 128 }
 0x7da   : > { %p2708_p6 = scmp.ne.s32.totalorder %s3334_s25, %s2707_s27  ;;  %s2809_s11 = smov [#allocation14]  }
 0x7db   : > { %s2711_s7 = sshll.u32 %s2809_s11, 4  ;;  %s2712_s7 = int_to_ptr.vmem [resolvable:$false] %s2711_s7 }
 0x7dc   : > { %p2709_p5 = pnand %p2708_p6, %p3451_p13  ;;  %s2713_s3 = scalar_lea.vmem %s2712_s7, 256 }
 0x7dd   : > { %p2714_p4 = scmp.lt.s32.totalorder %s3334_s25, %s2712_s7  ;;  %p2715_p10 = scmp.lt.s32.totalorder %s2713_s3, %s2707_s27 }
 0x7de   : > { %s3339_s5 = scalar_lea.hbm %s3452_s23, %s1965_s14  ;;  %p2710_p2 = pneg %p2709_p5 }
 0x7df   : > { %p2716_p3 = por %p2715_p10, %p2714_p4 }
 0x7e1   : > { %p2717_p8 = pnand %p2716_p3, %p2710_p2 }
 0x89b   : > { %v1697_v0 = vpop.f32.mrb[8].mxu1 }
 0x89c   : > { %1702 = vst [vmem:[%s453_s1] sm:$0xff] %v1697_v0  ;;  %v2246_v1 = vpop.f32.mrb[9].mxu1 }
 0x89d   : > { %2720 = shalt.err (!%p2717_p8)
}
 0x89e   : > { %s2721_s17 = scalar_lea.hbm %s3339_s5, 128  ;;  %s2725_s12 = scalar_lea.hbm %s3452_s23, 256 }
 0x89f   : > { %p2722_p12 = scmp.ne.s32.totalorder %s3339_s5, %s2721_s17  ;;  %p2726_p9 = scmp.lt.u32.totalorder %s3339_s5, %s3452_s23 }
 0x8a0   : > { %p2727_p11 = scmp.lt.u32.totalorder %s2725_s12, %s2721_s17  ;;  %p2729_p6 = scmp.lt.u32.totalorder %s2721_s17, %s3339_s5 }
 0x8a1   : > { %p2723_p0 = pnand %p2722_p12, %p3451_p13 }
 0x8a2   : > { %p2728_p1 = por %p2727_p11, %p2726_p9 }
 0x8a3   : > { %p2724_p7 = pneg %p2723_p0 }
 0x8a4   : > { %p2730_p5 = por %p2729_p6, %p2728_p1 }
 0x8a6   : > { %p2731_p2 = pnand %p2730_p5, %p2724_p7 }
 0x8a8   : > { %2734 = shalt.err (!%p2731_p2)
}
 0x8a9   : > { %2371 = dma.vmem_to_hbm [thread:$0]  (%p3451_p13), %s3334_s25, 128, %s3339_s5, %s1704_s8  }
 0x8aa PF: > { %s3453_s21 = sld [smem:[#allocation23_spill]]  ;;  %s3454_s20 = sld [smem:[#allocation27_spill]] }
 0x8ab   : > { %s3455_s15 = sld [smem:[#allocation24_spill]] }
 0x8b0   : > { %s1750_s16 = sand.u32 1, %s3453_s21   ;;  %p3456_p4 = scmp.ne.s32.totalorder %s3454_s20, 0 }
 0x8b1   : > { %p3457_p10 = scmp.ge.s32.totalorder %s3455_s15, 2  ;;  %s1751_s13 = scalar_lea.sflag [#allocation4], %s1750_s16 }
 0x8b3   : > { %p2399_p3 = pnand %p3457_p10, %p3456_p4 }
 0x8b5   : > { %2768 = dma.done.wait (!%p2399_p3), %s1751_s13, 128  }
 0x8b6   : > { %2770 = vsyncadd (!%p2399_p3), %s1751_s13, 4294967168  ;;  %s1760_s1 = scalar_lea.sflag [#allocation16], %s1750_s16 }
 0x8b7   : > { %2772 = dma.done.wait (!%p2399_p3), %s1760_s1, 512  }
 0x8b8   : > { %2774 = vsyncadd (!%p2399_p3), %s1760_s1, 4294966784  ;;  %s3458_s30 = sld [smem:[#allocation25_spill]]  ;;  %s3459_s22 = sld [smem:[#allocation26_spill]] }
 0x8b9   : > { %s3460_s27 = smov %s2781_s28  ;;  %s3461_s28 = smov %s2785_s29 }
 0x8be   : > { %p30_p13 = scmp.ge.s32.totalorder %s3458_s30, 4   ;;  %s3462_s29 = smov %s3459_s22 }
 0x8c0   :  { %32 = sbr.rel (!%p30_p13) target bundleno = 17 (0x11), region = 153 }
 0x8c7   :  { %1765 = vsyncpa [#allocation3], 1 }
 0x8c8   :  { %1767 = vsyncpa [#allocation3 + $0x1], 1 }
 0x8c9   :  { %1768 = vsyncpa [#allocation6], 1 }
 0x8ca   :  { %1770 = vsyncpa [#allocation6 + $0x1], 1 }
 0x8cb   :  { %1771 = vsyncpa [#allocation9], 1 }
 0x8cc   :  { %1772 = vsyncpa [#allocation12], 1 }
 0x8cd   :  { %1773 = vsyncpa [#allocation4], 1 }
 0x8ce   :  { %1775 = vsyncpa [#allocation4 + $0x1], 1 }
 0x8cf   :  { %1776 = vsyncpa [#allocation16], 1 }
 0x8d0   :  { %1778 = vsyncpa [#allocation16 + $0x1], 1 }

</bundles_post_ra>
